<compile_context>
chip_gen: v7x
topology: tpu7x:2x2x1
jax: 0.10.0
libtpu: 0.0.40
codegen_flags: <defaults>
</compile_context>

<pallas_src>
import functools
import math

import jax
import jax.numpy as jnp
from jax.experimental import pallas as pl
from jax.experimental.pallas import tpu as pltpu


def _convnext_kernel(widx_ref, hidx_ref, x_ref,
                     w1_ref, b1_ref, g1_ref, be1_ref,
                     w2_ref, b2_ref, g2_ref, be2_ref,
                     wcat_ref, bcat_ref,
                     out_ref, *, K, D, pad, W):
    N, Ci, HW = x_ref.shape
    H = HW // W

    w_idx = widx_ref[...]          # (1, 1, HW) int32: flat lane -> column index w
    h_idx = hidx_ref[...]          # (1, 1, HW) int32: flat lane -> row index h

    def roll_last(v, k):
        # out[..., i] = v[..., (i + k) % HW]   (pure lane rotation, unambiguous)
        k = k % HW
        if k == 0:
            return v
        return jnp.concatenate([v[..., k:], v[..., :k]], axis=-1)

    def shifted(v, dh, dw):
        # value of the (zero-padded H, circularly padded W) image at offset (dh, dw)
        if dw != 0:
            main = roll_last(v, dw)
            if dw > 0:
                wrap = roll_last(v, dw - W)          # same-row wrap-around source
                in_wrap = w_idx >= (W - dw)
            else:
                wrap = roll_last(v, dw + W)
                in_wrap = w_idx < (-dw)
            v = jnp.where(in_wrap, wrap, main)
        if dh != 0:
            v = roll_last(v, dh * W)                 # whole-row shift
            valid = (h_idx < H - dh) if dh > 0 else (h_idx >= -dh)
            v = jnp.where(valid, v, 0.0)             # zero H padding
        return v

    def conv_kxk(v, wm_ref, b_ref):
        # im2col: one (Cout, K*K*Cin) x (K*K*Cin, HW) matmul per batch element.
        cols = [shifted(v, kh * D - pad, kw * D - pad)
                for kh in range(K) for kw in range(K)]
        patches = jnp.concatenate(cols, axis=1)      # (N, K*K*Cin, HW)
        wm = wm_ref[...]
        b = b_ref[...]
        return jnp.stack(
            [jnp.dot(wm, patches[n], preferred_element_type=jnp.float32) + b
             for n in range(N)], axis=0)             # (N, Cout, HW)

    def batchnorm(v, g_ref, be_ref, eps=1e-5):
        # training-mode (biased) stats over (N, HW); one-pass sum / sum-of-squares
        inv_cnt = 1.0 / float(N * HW)
        mean = jnp.sum(v, axis=(0, 2), keepdims=True) * inv_cnt
        msq = jnp.sum(v * v, axis=(0, 2), keepdims=True) * inv_cnt
        var = msq - mean * mean
        return (v - mean) * jax.lax.rsqrt(var + eps) * g_ref[...] + be_ref[...]

    def capped_gelu(v, cap=1.0):
        # exact-GELU via Abramowitz-Stegun 7.1.26 erf approx (|err| < 1.5e-7),
        # then clamp(max=cap).
        z = v * (1.0 / math.sqrt(2.0))
        a = jnp.abs(z)
        t = 1.0 / (1.0 + 0.3275911 * a)
        poly = t * (0.254829592 + t * (-0.284496736 + t * (1.421413741
                    + t * (-1.453152027 + t * 1.061405429))))
        erf_a = 1.0 - poly * jnp.exp(-a * a)
        erf = jnp.where(z >= 0, erf_a, -erf_a)
        return jnp.minimum(0.5 * v * (1.0 + erf), cap)

    # conv1 (KxK, dilated) -> BN -> CappedGELU
    h = conv_kxk(x_ref[...], w1_ref, b1_ref)
    h = capped_gelu(batchnorm(h, g1_ref, be1_ref))

    # conv2 (KxK, dilated) -> BN -> CappedGELU
    h = conv_kxk(h, w2_ref, b2_ref)
    h = capped_gelu(batchnorm(h, g2_ref, be2_ref))

    # fused conv3 (1x1) + skip (1x1): y = [w3 | wskip] @ [h ; x] + (b3 + bskip)
    wcat = wcat_ref[...]                             # (Co, C1 + Ci)
    bcat = bcat_ref[...]                             # (Co, 1)
    for n in range(N):
        z = jnp.concatenate([h[n], x_ref[n]], axis=0)   # (C1 + Ci, HW)
        out_ref[n] = jnp.dot(wcat, z, preferred_element_type=jnp.float32) + bcat


def convnext_block(x_nchw, params, *, kernel_size=3, dilation=1):
    """Pallas ConvNeXtBlock. x_nchw: (N, Cin, H, W) f32 -> (N, Cout, H, W) f32.

    Params use torch-like layouts: w1/w2 are OIHW (Cout, Cin, K, K), w3/wskip are
    (Cout, Cin), biases / BN gamma / BN beta are (C,).  For the Cin==Cout identity
    skip case pass wskip = I, bskip = 0.
    """
    N, Ci, H, W = x_nchw.shape
    K, D = kernel_size, dilation
    pad = (K + (K - 1) * (D - 1) - 1) // 2
    C1 = params["w1"].shape[0]
    Co = params["w3"].shape[0]
    HW = H * W

    # Weights reordered to the in-kernel patch order (kh, kw, cin).
    w1mat = jnp.transpose(params["w1"], (0, 2, 3, 1)).reshape(C1, K * K * Ci)
    w2mat = jnp.transpose(params["w2"], (0, 2, 3, 1)).reshape(C1, K * K * C1)
    # Fuse final 1x1 conv with the 1x1 skip conv.
    wcat = jnp.concatenate([params["w3"], params["wskip"]], axis=1)   # (Co, C1+Ci)
    bcat = (params["b3"] + params["bskip"]).reshape(Co, 1)

    x_flat = x_nchw.reshape(N, Ci, HW).astype(jnp.float32)            # no transpose

    col = lambda a: a.reshape(-1, 1).astype(jnp.float32)
    w_idx = jnp.tile(jnp.arange(W, dtype=jnp.int32), H).reshape(1, 1, HW)
    h_idx = jnp.repeat(jnp.arange(H, dtype=jnp.int32), W).reshape(1, 1, HW)

    args = (w_idx, h_idx, x_flat,
            w1mat.astype(jnp.float32), col(params["b1"]),
            col(params["g1"]), col(params["beta1"]),
            w2mat.astype(jnp.float32), col(params["b2"]),
            col(params["g2"]), col(params["beta2"]),
            wcat.astype(jnp.float32), bcat.astype(jnp.float32))

    kernel = functools.partial(_convnext_kernel, K=K, D=D, pad=pad, W=W)

    out = pl.pallas_call(
        kernel,
        out_shape=jax.ShapeDtypeStruct((N, Co, HW), jnp.float32),     # lane-dense
        in_specs=[pl.BlockSpec(memory_space=pltpu.MemorySpace.VMEM)
                  for _ in range(len(args))],
        out_specs=pl.BlockSpec(memory_space=pltpu.MemorySpace.VMEM),
        compiler_params=pltpu.CompilerParams(vmem_limit_bytes=32 * 1024 * 1024),
    )(*args)

    return out.reshape(N, Co, H, W)                                    # free reshape


# ---------------- pure-JAX reference (for correctness check) ----------------
def convnext_ref(x_nchw, params, *, kernel_size=3, dilation=1):
    pad = (kernel_size + (kernel_size - 1) * (dilation - 1) - 1) // 2

    def conv2d(x, w_oihw, b, dil):
        y = jax.lax.conv_general_dilated(
            x, w_oihw, window_strides=(1, 1), padding="VALID",
            rhs_dilation=(dil, dil),
            dimension_numbers=("NCHW", "OIHW", "NCHW"))
        return y + b.reshape(1, -1, 1, 1)

    def pad_x(x):
        x = jnp.pad(x, ((0, 0), (0, 0), (0, 0), (pad, pad)), mode="wrap")
        x = jnp.pad(x, ((0, 0), (0, 0), (pad, pad), (0, 0)), mode="constant")
        return x

    def bn(x, g, b, eps=1e-5):
        mean = jnp.mean(x, axis=(0, 2, 3), keepdims=True)
        var = jnp.mean((x - mean) ** 2, axis=(0, 2, 3), keepdims=True)
        return ((x - mean) * jax.lax.rsqrt(var + eps)
                * g.reshape(1, -1, 1, 1) + b.reshape(1, -1, 1, 1))

    def cgelu(x, cap=1.0):
        g = 0.5 * x * (1.0 + jax.scipy.special.erf(x / jnp.sqrt(2.0)))
        return jnp.minimum(g, cap)

    skip = conv2d(x_nchw, params["wskip"][:, :, None, None], params["bskip"], 1)
    h = conv2d(pad_x(x_nchw), params["w1"], params["b1"], dilation)
    h = cgelu(bn(h, params["g1"], params["beta1"]))
    h = conv2d(pad_x(h), params["w2"], params["b2"], dilation)
    h = cgelu(bn(h, params["g2"], params["beta2"]))
    h = conv2d(h, params["w3"][:, :, None, None], params["b3"], 1)
    return skip + h


if __name__ == "__main__":
    key = jax.random.PRNGKey(0)
    N, Ci, H, W = 2, 4, 16, 16
    Co, K, D, up = 2, 3, 1, 4
    C1 = Ci * up

    keys = jax.random.split(key, 13)

    def rnd(k, shape, scale=0.1):
        return (scale * jax.random.normal(k, shape)).astype(jnp.float32)

    params = dict(
        w1=rnd(keys[0], (C1, Ci, K, K)), b1=rnd(keys[1], (C1,)),
        g1=(1.0 + rnd(keys[2], (C1,))).astype(jnp.float32),
        beta1=rnd(keys[3], (C1,)),
        w2=rnd(keys[4], (C1, C1, K, K)), b2=rnd(keys[5], (C1,)),
        g2=(1.0 + rnd(keys[6], (C1,))).astype(jnp.float32),
        beta2=rnd(keys[7], (C1,)),
        w3=rnd(keys[8], (Co, C1)), b3=rnd(keys[9], (Co,)),
        wskip=rnd(keys[10], (Co, Ci)), bskip=rnd(keys[11], (Co,)),
    )
    x = jax.random.normal(keys[12], (N, Ci, H, W), dtype=jnp.float32)

    out = jax.block_until_ready(convnext_block(x, params, kernel_size=K, dilation=D))
    ref = jax.block_until_ready(convnext_ref(x, params, kernel_size=K, dilation=D))

    assert out.shape == (N, Co, H, W), out.shape
    max_err = float(jnp.max(jnp.abs(out - ref)))
    if not bool(jnp.allclose(out, ref, atol=1e-4, rtol=1e-4)):
        raise SystemExit(f"mismatch vs reference, max abs err = {max_err:e}")
    print("KERNEL_OK")
</pallas_src>

<mosaic_0001>
module attributes {stable_mosaic.version = 11 : i64} {
  func.func @_convnext_kernel(%arg0: memref<1x1x256xi32, #tpu.memory_space<vmem>>, %arg1: memref<1x1x256xi32, #tpu.memory_space<vmem>>, %arg2: memref<2x4x256xf32, #tpu.memory_space<vmem>>, %arg3: memref<16x36xf32, #tpu.memory_space<vmem>>, %arg4: memref<16x1xf32, #tpu.memory_space<vmem>>, %arg5: memref<16x1xf32, #tpu.memory_space<vmem>>, %arg6: memref<16x1xf32, #tpu.memory_space<vmem>>, %arg7: memref<16x144xf32, #tpu.memory_space<vmem>>, %arg8: memref<16x1xf32, #tpu.memory_space<vmem>>, %arg9: memref<16x1xf32, #tpu.memory_space<vmem>>, %arg10: memref<16x1xf32, #tpu.memory_space<vmem>>, %arg11: memref<2x20xf32, #tpu.memory_space<vmem>>, %arg12: memref<2x1xf32, #tpu.memory_space<vmem>>, %arg13: memref<2x2x256xf32, #tpu.memory_space<vmem>>) attributes {dimension_semantics = [], scalar_prefetch = 0 : i64, scratch_operands = 0 : i64, tpu.core_type = #tpu.core_type<tc>} {
    %c0 = arith.constant 0 : index
    %c0_0 = arith.constant 0 : index
    %c0_1 = arith.constant 0 : index
    %0 = vector.load %arg0[%c0, %c0_0, %c0_1] : memref<1x1x256xi32, #tpu.memory_space<vmem>>, vector<1x1x256xi32>
    %c0_2 = arith.constant 0 : index
    %c0_3 = arith.constant 0 : index
    %c0_4 = arith.constant 0 : index
    %1 = vector.load %arg1[%c0_2, %c0_3, %c0_4] : memref<1x1x256xi32, #tpu.memory_space<vmem>>, vector<1x1x256xi32>
    %c0_5 = arith.constant 0 : index
    %c0_6 = arith.constant 0 : index
    %c0_7 = arith.constant 0 : index
    %2 = vector.load %arg2[%c0_5, %c0_6, %c0_7] : memref<2x4x256xf32, #tpu.memory_space<vmem>>, vector<2x4x256xf32>
    %3 = vector.extract_strided_slice %2 {offsets = [0, 0, 255], sizes = [2, 4, 1], strides = [1, 1, 1]} : vector<2x4x256xf32> to vector<2x4x1xf32>
    %4 = vector.extract_strided_slice %2 {offsets = [0, 0, 0], sizes = [2, 4, 255], strides = [1, 1, 1]} : vector<2x4x256xf32> to vector<2x4x255xf32>
    %5 = tpu.concatenate %3, %4 in 2 : vector<2x4x1xf32>, vector<2x4x255xf32> -> vector<2x4x256xf32>
    %6 = vector.extract_strided_slice %2 {offsets = [0, 0, 15], sizes = [2, 4, 241], strides = [1, 1, 1]} : vector<2x4x256xf32> to vector<2x4x241xf32>
    %7 = vector.extract_strided_slice %2 {offsets = [0, 0, 0], sizes = [2, 4, 15], strides = [1, 1, 1]} : vector<2x4x256xf32> to vector<2x4x15xf32>
    %8 = tpu.concatenate %6, %7 in 2 : vector<2x4x241xf32>, vector<2x4x15xf32> -> vector<2x4x256xf32>
    %c1_i32 = arith.constant 1 : i32
    %9 = vector.broadcast %c1_i32 : i32 to vector<1x1x256xi32>
    %10 = arith.cmpi slt, %0, %9 : vector<1x1x256xi32>
    %11 = vector.shape_cast %10 : vector<1x1x256xi1> to vector<1x1x256xi1>
    %12 = vector.broadcast %11 : vector<1x1x256xi1> to vector<2x4x256xi1>
    %13 = arith.select %12, %8, %5 : vector<2x4x256xi1>, vector<2x4x256xf32>
    %14 = vector.extract_strided_slice %13 {offsets = [0, 0, 240], sizes = [2, 4, 16], strides = [1, 1, 1]} : vector<2x4x256xf32> to vector<2x4x16xf32>
    %15 = vector.extract_strided_slice %13 {offsets = [0, 0, 0], sizes = [2, 4, 240], strides = [1, 1, 1]} : vector<2x4x256xf32> to vector<2x4x240xf32>
    %16 = tpu.concatenate %14, %15 in 2 : vector<2x4x16xf32>, vector<2x4x240xf32> -> vector<2x4x256xf32>
    %c1_i32_8 = arith.constant 1 : i32
    %17 = vector.broadcast %c1_i32_8 : i32 to vector<1x1x256xi32>
    %18 = arith.cmpi sge, %1, %17 : vector<1x1x256xi32>
    %cst = arith.constant 0.000000e+00 : f32
    %19 = vector.shape_cast %18 : vector<1x1x256xi1> to vector<1x1x256xi1>
    %20 = vector.broadcast %19 : vector<1x1x256xi1> to vector<2x4x256xi1>
    %21 = vector.broadcast %cst : f32 to vector<2x4x256xf32>
    %22 = arith.select %20, %16, %21 : vector<2x4x256xi1>, vector<2x4x256xf32>
    %23 = vector.extract_strided_slice %2 {offsets = [0, 0, 240], sizes = [2, 4, 16], strides = [1, 1, 1]} : vector<2x4x256xf32> to vector<2x4x16xf32>
    %24 = vector.extract_strided_slice %2 {offsets = [0, 0, 0], sizes = [2, 4, 240], strides = [1, 1, 1]} : vector<2x4x256xf32> to vector<2x4x240xf32>
    %25 = tpu.concatenate %23, %24 in 2 : vector<2x4x16xf32>, vector<2x4x240xf32> -> vector<2x4x256xf32>
    %c1_i32_9 = arith.constant 1 : i32
    %26 = vector.broadcast %c1_i32_9 : i32 to vector<1x1x256xi32>
    %27 = arith.cmpi sge, %1, %26 : vector<1x1x256xi32>
    %cst_10 = arith.constant 0.000000e+00 : f32
    %28 = vector.shape_cast %27 : vector<1x1x256xi1> to vector<1x1x256xi1>
    %29 = vector.broadcast %28 : vector<1x1x256xi1> to vector<2x4x256xi1>
    %30 = vector.broadcast %cst_10 : f32 to vector<2x4x256xf32>
    %31 = arith.select %29, %25, %30 : vector<2x4x256xi1>, vector<2x4x256xf32>
    %32 = vector.extract_strided_slice %2 {offsets = [0, 0, 1], sizes = [2, 4, 255], strides = [1, 1, 1]} : vector<2x4x256xf32> to vector<2x4x255xf32>
    %33 = vector.extract_strided_slice %2 {offsets = [0, 0, 0], sizes = [2, 4, 1], strides = [1, 1, 1]} : vector<2x4x256xf32> to vector<2x4x1xf32>
    %34 = tpu.concatenate %32, %33 in 2 : vector<2x4x255xf32>, vector<2x4x1xf32> -> vector<2x4x256xf32>
    %35 = vector.extract_strided_slice %2 {offsets = [0, 0, 241], sizes = [2, 4, 15], strides = [1, 1, 1]} : vector<2x4x256xf32> to vector<2x4x15xf32>
    %36 = vector.extract_strided_slice %2 {offsets = [0, 0, 0], sizes = [2, 4, 241], strides = [1, 1, 1]} : vector<2x4x256xf32> to vector<2x4x241xf32>
    %37 = tpu.concatenate %35, %36 in 2 : vector<2x4x15xf32>, vector<2x4x241xf32> -> vector<2x4x256xf32>
    %c15_i32 = arith.constant 15 : i32
    %38 = vector.broadcast %c15_i32 : i32 to vector<1x1x256xi32>
    %39 = arith.cmpi sge, %0, %38 : vector<1x1x256xi32>
    %40 = vector.shape_cast %39 : vector<1x1x256xi1> to vector<1x1x256xi1>
    %41 = vector.broadcast %40 : vector<1x1x256xi1> to vector<2x4x256xi1>
    %42 = arith.select %41, %37, %34 : vector<2x4x256xi1>, vector<2x4x256xf32>
    %43 = vector.extract_strided_slice %42 {offsets = [0, 0, 240], sizes = [2, 4, 16], strides = [1, 1, 1]} : vector<2x4x256xf32> to vector<2x4x16xf32>
    %44 = vector.extract_strided_slice %42 {offsets = [0, 0, 0], sizes = [2, 4, 240], strides = [1, 1, 1]} : vector<2x4x256xf32> to vector<2x4x240xf32>
    %45 = tpu.concatenate %43, %44 in 2 : vector<2x4x16xf32>, vector<2x4x240xf32> -> vector<2x4x256xf32>
    %c1_i32_11 = arith.constant 1 : i32
    %46 = vector.broadcast %c1_i32_11 : i32 to vector<1x1x256xi32>
    %47 = arith.cmpi sge, %1, %46 : vector<1x1x256xi32>
    %cst_12 = arith.constant 0.000000e+00 : f32
    %48 = vector.shape_cast %47 : vector<1x1x256xi1> to vector<1x1x256xi1>
    %49 = vector.broadcast %48 : vector<1x1x256xi1> to vector<2x4x256xi1>
    %50 = vector.broadcast %cst_12 : f32 to vector<2x4x256xf32>
    %51 = arith.select %49, %45, %50 : vector<2x4x256xi1>, vector<2x4x256xf32>
    %52 = vector.extract_strided_slice %2 {offsets = [0, 0, 255], sizes = [2, 4, 1], strides = [1, 1, 1]} : vector<2x4x256xf32> to vector<2x4x1xf32>
    %53 = vector.extract_strided_slice %2 {offsets = [0, 0, 0], sizes = [2, 4, 255], strides = [1, 1, 1]} : vector<2x4x256xf32> to vector<2x4x255xf32>
    %54 = tpu.concatenate %52, %53 in 2 : vector<2x4x1xf32>, vector<2x4x255xf32> -> vector<2x4x256xf32>
    %55 = vector.extract_strided_slice %2 {offsets = [0, 0, 15], sizes = [2, 4, 241], strides = [1, 1, 1]} : vector<2x4x256xf32> to vector<2x4x241xf32>
    %56 = vector.extract_strided_slice %2 {offsets = [0, 0, 0], sizes = [2, 4, 15], strides = [1, 1, 1]} : vector<2x4x256xf32> to vector<2x4x15xf32>
    %57 = tpu.concatenate %55, %56 in 2 : vector<2x4x241xf32>, vector<2x4x15xf32> -> vector<2x4x256xf32>
    %c1_i32_13 = arith.constant 1 : i32
    %58 = vector.broadcast %c1_i32_13 : i32 to vector<1x1x256xi32>
    %59 = arith.cmpi slt, %0, %58 : vector<1x1x256xi32>
    %60 = vector.shape_cast %59 : vector<1x1x256xi1> to vector<1x1x256xi1>
    %61 = vector.broadcast %60 : vector<1x1x256xi1> to vector<2x4x256xi1>
    %62 = arith.select %61, %57, %54 : vector<2x4x256xi1>, vector<2x4x256xf32>
    %63 = vector.extract_strided_slice %2 {offsets = [0, 0, 1], sizes = [2, 4, 255], strides = [1, 1, 1]} : vector<2x4x256xf32> to vector<2x4x255xf32>
    %64 = vector.extract_strided_slice %2 {offsets = [0, 0, 0], sizes = [2, 4, 1], strides = [1, 1, 1]} : vector<2x4x256xf32> to vector<2x4x1xf32>
    %65 = tpu.concatenate %63, %64 in 2 : vector<2x4x255xf32>, vector<2x4x1xf32> -> vector<2x4x256xf32>
    %66 = vector.extract_strided_slice %2 {offsets = [0, 0, 241], sizes = [2, 4, 15], strides = [1, 1, 1]} : vector<2x4x256xf32> to vector<2x4x15xf32>
    %67 = vector.extract_strided_slice %2 {offsets = [0, 0, 0], sizes = [2, 4, 241], strides = [1, 1, 1]} : vector<2x4x256xf32> to vector<2x4x241xf32>
    %68 = tpu.concatenate %66, %67 in 2 : vector<2x4x15xf32>, vector<2x4x241xf32> -> vector<2x4x256xf32>
    %c15_i32_14 = arith.constant 15 : i32
    %69 = vector.broadcast %c15_i32_14 : i32 to vector<1x1x256xi32>
    %70 = arith.cmpi sge, %0, %69 : vector<1x1x256xi32>
    %71 = vector.shape_cast %70 : vector<1x1x256xi1> to vector<1x1x256xi1>
    %72 = vector.broadcast %71 : vector<1x1x256xi1> to vector<2x4x256xi1>
    %73 = arith.select %72, %68, %65 : vector<2x4x256xi1>, vector<2x4x256xf32>
    %74 = vector.extract_strided_slice %2 {offsets = [0, 0, 255], sizes = [2, 4, 1], strides = [1, 1, 1]} : vector<2x4x256xf32> to vector<2x4x1xf32>
    %75 = vector.extract_strided_slice %2 {offsets = [0, 0, 0], sizes = [2, 4, 255], strides = [1, 1, 1]} : vector<2x4x256xf32> to vector<2x4x255xf32>
    %76 = tpu.concatenate %74, %75 in 2 : vector<2x4x1xf32>, vector<2x4x255xf32> -> vector<2x4x256xf32>
    %77 = vector.extract_strided_slice %2 {offsets = [0, 0, 15], sizes = [2, 4, 241], strides = [1, 1, 1]} : vector<2x4x256xf32> to vector<2x4x241xf32>
    %78 = vector.extract_strided_slice %2 {offsets = [0, 0, 0], sizes = [2, 4, 15], strides = [1, 1, 1]} : vector<2x4x256xf32> to vector<2x4x15xf32>
    %79 = tpu.concatenate %77, %78 in 2 : vector<2x4x241xf32>, vector<2x4x15xf32> -> vector<2x4x256xf32>
    %c1_i32_15 = arith.constant 1 : i32
    %80 = vector.broadcast %c1_i32_15 : i32 to vector<1x1x256xi32>
    %81 = arith.cmpi slt, %0, %80 : vector<1x1x256xi32>
    %82 = vector.shape_cast %81 : vector<1x1x256xi1> to vector<1x1x256xi1>
    %83 = vector.broadcast %82 : vector<1x1x256xi1> to vector<2x4x256xi1>
    %84 = arith.select %83, %79, %76 : vector<2x4x256xi1>, vector<2x4x256xf32>
    %85 = vector.extract_strided_slice %84 {offsets = [0, 0, 16], sizes = [2, 4, 240], strides = [1, 1, 1]} : vector<2x4x256xf32> to vector<2x4x240xf32>
    %86 = vector.extract_strided_slice %84 {offsets = [0, 0, 0], sizes = [2, 4, 16], strides = [1, 1, 1]} : vector<2x4x256xf32> to vector<2x4x16xf32>
    %87 = tpu.concatenate %85, %86 in 2 : vector<2x4x240xf32>, vector<2x4x16xf32> -> vector<2x4x256xf32>
    %c15_i32_16 = arith.constant 15 : i32
    %88 = vector.broadcast %c15_i32_16 : i32 to vector<1x1x256xi32>
    %89 = arith.cmpi slt, %1, %88 : vector<1x1x256xi32>
    %cst_17 = arith.constant 0.000000e+00 : f32
    %90 = vector.shape_cast %89 : vector<1x1x256xi1> to vector<1x1x256xi1>
    %91 = vector.broadcast %90 : vector<1x1x256xi1> to vector<2x4x256xi1>
    %92 = vector.broadcast %cst_17 : f32 to vector<2x4x256xf32>
    %93 = arith.select %91, %87, %92 : vector<2x4x256xi1>, vector<2x4x256xf32>
    %94 = vector.extract_strided_slice %2 {offsets = [0, 0, 16], sizes = [2, 4, 240], strides = [1, 1, 1]} : vector<2x4x256xf32> to vector<2x4x240xf32>
    %95 = vector.extract_strided_slice %2 {offsets = [0, 0, 0], sizes = [2, 4, 16], strides = [1, 1, 1]} : vector<2x4x256xf32> to vector<2x4x16xf32>
    %96 = tpu.concatenate %94, %95 in 2 : vector<2x4x240xf32>, vector<2x4x16xf32> -> vector<2x4x256xf32>
    %c15_i32_18 = arith.constant 15 : i32
    %97 = vector.broadcast %c15_i32_18 : i32 to vector<1x1x256xi32>
    %98 = arith.cmpi slt, %1, %97 : vector<1x1x256xi32>
    %cst_19 = arith.constant 0.000000e+00 : f32
    %99 = vector.shape_cast %98 : vector<1x1x256xi1> to vector<1x1x256xi1>
    %100 = vector.broadcast %99 : vector<1x1x256xi1> to vector<2x4x256xi1>
    %101 = vector.broadcast %cst_19 : f32 to vector<2x4x256xf32>
    %102 = arith.select %100, %96, %101 : vector<2x4x256xi1>, vector<2x4x256xf32>
    %103 = vector.extract_strided_slice %2 {offsets = [0, 0, 1], sizes = [2, 4, 255], strides = [1, 1, 1]} : vector<2x4x256xf32> to vector<2x4x255xf32>
    %104 = vector.extract_strided_slice %2 {offsets = [0, 0, 0], sizes = [2, 4, 1], strides = [1, 1, 1]} : vector<2x4x256xf32> to vector<2x4x1xf32>
    %105 = tpu.concatenate %103, %104 in 2 : vector<2x4x255xf32>, vector<2x4x1xf32> -> vector<2x4x256xf32>
    %106 = vector.extract_strided_slice %2 {offsets = [0, 0, 241], sizes = [2, 4, 15], strides = [1, 1, 1]} : vector<2x4x256xf32> to vector<2x4x15xf32>
    %107 = vector.extract_strided_slice %2 {offsets = [0, 0, 0], sizes = [2, 4, 241], strides = [1, 1, 1]} : vector<2x4x256xf32> to vector<2x4x241xf32>
    %108 = tpu.concatenate %106, %107 in 2 : vector<2x4x15xf32>, vector<2x4x241xf32> -> vector<2x4x256xf32>
    %c15_i32_20 = arith.constant 15 : i32
    %109 = vector.broadcast %c15_i32_20 : i32 to vector<1x1x256xi32>
    %110 = arith.cmpi sge, %0, %109 : vector<1x1x256xi32>
    %111 = vector.shape_cast %110 : vector<1x1x256xi1> to vector<1x1x256xi1>
    %112 = vector.broadcast %111 : vector<1x1x256xi1> to vector<2x4x256xi1>
    %113 = arith.select %112, %108, %105 : vector<2x4x256xi1>, vector<2x4x256xf32>
    %114 = vector.extract_strided_slice %113 {offsets = [0, 0, 16], sizes = [2, 4, 240], strides = [1, 1, 1]} : vector<2x4x256xf32> to vector<2x4x240xf32>
    %115 = vector.extract_strided_slice %113 {offsets = [0, 0, 0], sizes = [2, 4, 16], strides = [1, 1, 1]} : vector<2x4x256xf32> to vector<2x4x16xf32>
    %116 = tpu.concatenate %114, %115 in 2 : vector<2x4x240xf32>, vector<2x4x16xf32> -> vector<2x4x256xf32>
    %c15_i32_21 = arith.constant 15 : i32
    %117 = vector.broadcast %c15_i32_21 : i32 to vector<1x1x256xi32>
    %118 = arith.cmpi slt, %1, %117 : vector<1x1x256xi32>
    %cst_22 = arith.constant 0.000000e+00 : f32
    %119 = vector.shape_cast %118 : vector<1x1x256xi1> to vector<1x1x256xi1>
    %120 = vector.broadcast %119 : vector<1x1x256xi1> to vector<2x4x256xi1>
    %121 = vector.broadcast %cst_22 : f32 to vector<2x4x256xf32>
    %122 = arith.select %120, %116, %121 : vector<2x4x256xi1>, vector<2x4x256xf32>
    %123 = tpu.concatenate %22, %31, %51, %62, %2, %73, %93, %102, %122 in 1 : vector<2x4x256xf32>, vector<2x4x256xf32>, vector<2x4x256xf32>, vector<2x4x256xf32>, vector<2x4x256xf32>, vector<2x4x256xf32>, vector<2x4x256xf32>, vector<2x4x256xf32>, vector<2x4x256xf32> -> vector<2x36x256xf32>
    %c0_23 = arith.constant 0 : index
    %c0_24 = arith.constant 0 : index
    %124 = vector.load %arg3[%c0_23, %c0_24] : memref<16x36xf32, #tpu.memory_space<vmem>>, vector<16x36xf32>
    %c0_25 = arith.constant 0 : index
    %c0_26 = arith.constant 0 : index
    %125 = vector.load %arg4[%c0_25, %c0_26] : memref<16x1xf32, #tpu.memory_space<vmem>>, vector<16x1xf32>
    %126 = vector.extract_strided_slice %123 {offsets = [0, 0, 0], sizes = [1, 36, 256], strides = [1, 1, 1]} : vector<2x36x256xf32> to vector<1x36x256xf32>
    %127 = vector.shape_cast %126 : vector<1x36x256xf32> to vector<36x256xf32>
    %cst_27 = arith.constant dense<0.000000e+00> : vector<16x256xf32>
    %128 = tpu.matmul %124, %127, %cst_27 {dimension_numbers = #tpu.dot_dimension_numbers<[1], [0], [0], [1], [0, 0, 1, 1], [], []>} : vector<16x36xf32>, vector<36x256xf32>, vector<16x256xf32> -> vector<16x256xf32>
    %129 = vector.broadcast %125 : vector<16x1xf32> to vector<16x256xf32>
    %130 = arith.addf %128, %129 : vector<16x256xf32>
    %131 = vector.extract_strided_slice %123 {offsets = [1, 0, 0], sizes = [1, 36, 256], strides = [1, 1, 1]} : vector<2x36x256xf32> to vector<1x36x256xf32>
    %132 = vector.shape_cast %131 : vector<1x36x256xf32> to vector<36x256xf32>
    %cst_28 = arith.constant dense<0.000000e+00> : vector<16x256xf32>
    %133 = tpu.matmul %124, %132, %cst_28 {dimension_numbers = #tpu.dot_dimension_numbers<[1], [0], [0], [1], [0, 0, 1, 1], [], []>} : vector<16x36xf32>, vector<36x256xf32>, vector<16x256xf32> -> vector<16x256xf32>
    %134 = vector.broadcast %125 : vector<16x1xf32> to vector<16x256xf32>
    %135 = arith.addf %133, %134 : vector<16x256xf32>
    %136 = vector.shape_cast %130 : vector<16x256xf32> to vector<1x16x256xf32>
    %137 = vector.shape_cast %135 : vector<16x256xf32> to vector<1x16x256xf32>
    %138 = tpu.concatenate %136, %137 in 0 : vector<1x16x256xf32>, vector<1x16x256xf32> -> vector<2x16x256xf32>
    %cst_29 = arith.constant dense<0.000000e+00> : vector<16xf32>
    %139 = vector.multi_reduction <add>, %138, %cst_29 [0, 2] : vector<2x16x256xf32> to vector<16xf32>
    %140 = vector.shape_cast %139 : vector<16xf32> to vector<1x16x1xf32>
    %cst_30 = arith.constant 0.001953125 : f32
    %141 = vector.broadcast %cst_30 : f32 to vector<1x16x1xf32>
    %142 = arith.mulf %140, %141 : vector<1x16x1xf32>
    %143 = arith.mulf %138, %138 : vector<2x16x256xf32>
    %cst_31 = arith.constant dense<0.000000e+00> : vector<16xf32>
    %144 = vector.multi_reduction <add>, %143, %cst_31 [0, 2] : vector<2x16x256xf32> to vector<16xf32>
    %145 = vector.shape_cast %144 : vector<16xf32> to vector<1x16x1xf32>
    %cst_32 = arith.constant 0.001953125 : f32
    %146 = vector.broadcast %cst_32 : f32 to vector<1x16x1xf32>
    %147 = arith.mulf %145, %146 : vector<1x16x1xf32>
    %148 = arith.mulf %142, %142 : vector<1x16x1xf32>
    %149 = arith.subf %147, %148 : vector<1x16x1xf32>
    %150 = vector.broadcast %142 : vector<1x16x1xf32> to vector<2x16x256xf32>
    %151 = arith.subf %138, %150 : vector<2x16x256xf32>
    %cst_33 = arith.constant 9.99999974E-6 : f32
    %152 = vector.broadcast %cst_33 : f32 to vector<1x16x1xf32>
    %153 = arith.addf %149, %152 : vector<1x16x1xf32>
    %154 = math.rsqrt %153 : vector<1x16x1xf32>
    %155 = vector.broadcast %154 : vector<1x16x1xf32> to vector<2x16x256xf32>
    %156 = arith.mulf %151, %155 : vector<2x16x256xf32>
    %c0_34 = arith.constant 0 : index
    %c0_35 = arith.constant 0 : index
    %157 = vector.load %arg5[%c0_34, %c0_35] : memref<16x1xf32, #tpu.memory_space<vmem>>, vector<16x1xf32>
    %158 = vector.shape_cast %157 : vector<16x1xf32> to vector<1x16x1xf32>
    %159 = vector.broadcast %158 : vector<1x16x1xf32> to vector<2x16x256xf32>
    %160 = arith.mulf %156, %159 : vector<2x16x256xf32>
    %c0_36 = arith.constant 0 : index
    %c0_37 = arith.constant 0 : index
    %161 = vector.load %arg6[%c0_36, %c0_37] : memref<16x1xf32, #tpu.memory_space<vmem>>, vector<16x1xf32>
    %162 = vector.shape_cast %161 : vector<16x1xf32> to vector<1x16x1xf32>
    %163 = vector.broadcast %162 : vector<1x16x1xf32> to vector<2x16x256xf32>
    %164 = arith.addf %160, %163 : vector<2x16x256xf32>
    %cst_38 = arith.constant 0.707106769 : f32
    %165 = vector.broadcast %cst_38 : f32 to vector<2x16x256xf32>
    %166 = arith.mulf %164, %165 : vector<2x16x256xf32>
    %167 = math.absf %166 : vector<2x16x256xf32>
    %cst_39 = arith.constant 0.327591091 : f32
    %168 = vector.broadcast %cst_39 : f32 to vector<2x16x256xf32>
    %169 = arith.mulf %168, %167 : vector<2x16x256xf32>
    %cst_40 = arith.constant 1.000000e+00 : f32
    %170 = vector.broadcast %cst_40 : f32 to vector<2x16x256xf32>
    %171 = arith.addf %170, %169 : vector<2x16x256xf32>
    %cst_41 = arith.constant 1.000000e+00 : f32
    %172 = vector.broadcast %cst_41 : f32 to vector<2x16x256xf32>
    %173 = arith.divf %172, %171 : vector<2x16x256xf32>
    %cst_42 = arith.constant 1.06140542 : f32
    %174 = vector.broadcast %cst_42 : f32 to vector<2x16x256xf32>
    %175 = arith.mulf %173, %174 : vector<2x16x256xf32>
    %cst_43 = arith.constant -1.45315206 : f32
    %176 = vector.broadcast %cst_43 : f32 to vector<2x16x256xf32>
    %177 = arith.addf %176, %175 : vector<2x16x256xf32>
    %178 = arith.mulf %173, %177 : vector<2x16x256xf32>
    %cst_44 = arith.constant 1.42141378 : f32
    %179 = vector.broadcast %cst_44 : f32 to vector<2x16x256xf32>
    %180 = arith.addf %179, %178 : vector<2x16x256xf32>
    %181 = arith.mulf %173, %180 : vector<2x16x256xf32>
    %cst_45 = arith.constant -0.284496725 : f32
    %182 = vector.broadcast %cst_45 : f32 to vector<2x16x256xf32>
    %183 = arith.addf %182, %181 : vector<2x16x256xf32>
    %184 = arith.mulf %173, %183 : vector<2x16x256xf32>
    %cst_46 = arith.constant 0.254829586 : f32
    %185 = vector.broadcast %cst_46 : f32 to vector<2x16x256xf32>
    %186 = arith.addf %185, %184 : vector<2x16x256xf32>
    %187 = arith.mulf %173, %186 : vector<2x16x256xf32>
    %cst_47 = arith.constant 0.000000e+00 : f32
    %188 = vector.broadcast %cst_47 : f32 to vector<2x16x256xf32>
    %189 = arith.subf %188, %167 : vector<2x16x256xf32>
    %190 = arith.mulf %189, %167 : vector<2x16x256xf32>
    %191 = math.exp %190 : vector<2x16x256xf32>
    %192 = arith.mulf %187, %191 : vector<2x16x256xf32>
    %cst_48 = arith.constant 1.000000e+00 : f32
    %193 = vector.broadcast %cst_48 : f32 to vector<2x16x256xf32>
    %194 = arith.subf %193, %192 : vector<2x16x256xf32>
    %cst_49 = arith.constant 0.000000e+00 : f32
    %195 = vector.broadcast %cst_49 : f32 to vector<2x16x256xf32>
    %196 = arith.cmpf oge, %166, %195 : vector<2x16x256xf32>
    %cst_50 = arith.constant 0.000000e+00 : f32
    %197 = vector.broadcast %cst_50 : f32 to vector<2x16x256xf32>
    %198 = arith.subf %197, %194 : vector<2x16x256xf32>
    %199 = arith.select %196, %194, %198 : vector<2x16x256xi1>, vector<2x16x256xf32>
    %cst_51 = arith.constant 5.000000e-01 : f32
    %200 = vector.broadcast %cst_51 : f32 to vector<2x16x256xf32>
    %201 = arith.mulf %200, %164 : vector<2x16x256xf32>
    %cst_52 = arith.constant 1.000000e+00 : f32
    %202 = vector.broadcast %cst_52 : f32 to vector<2x16x256xf32>
    %203 = arith.addf %202, %199 : vector<2x16x256xf32>
    %204 = arith.mulf %201, %203 : vector<2x16x256xf32>
    %cst_53 = arith.constant 1.000000e+00 : f32
    %205 = vector.broadcast %cst_53 : f32 to vector<2x16x256xf32>
    %206 = arith.minimumf %204, %205 : vector<2x16x256xf32>
    %207 = vector.extract_strided_slice %206 {offsets = [0, 0, 255], sizes = [2, 16, 1], strides = [1, 1, 1]} : vector<2x16x256xf32> to vector<2x16x1xf32>
    %208 = vector.extract_strided_slice %206 {offsets = [0, 0, 0], sizes = [2, 16, 255], strides = [1, 1, 1]} : vector<2x16x256xf32> to vector<2x16x255xf32>
    %209 = tpu.concatenate %207, %208 in 2 : vector<2x16x1xf32>, vector<2x16x255xf32> -> vector<2x16x256xf32>
    %210 = vector.extract_strided_slice %206 {offsets = [0, 0, 15], sizes = [2, 16, 241], strides = [1, 1, 1]} : vector<2x16x256xf32> to vector<2x16x241xf32>
    %211 = vector.extract_strided_slice %206 {offsets = [0, 0, 0], sizes = [2, 16, 15], strides = [1, 1, 1]} : vector<2x16x256xf32> to vector<2x16x15xf32>
    %212 = tpu.concatenate %210, %211 in 2 : vector<2x16x241xf32>, vector<2x16x15xf32> -> vector<2x16x256xf32>
    %c1_i32_54 = arith.constant 1 : i32
    %213 = vector.broadcast %c1_i32_54 : i32 to vector<1x1x256xi32>
    %214 = arith.cmpi slt, %0, %213 : vector<1x1x256xi32>
    %215 = vector.shape_cast %214 : vector<1x1x256xi1> to vector<1x1x256xi1>
    %216 = vector.broadcast %215 : vector<1x1x256xi1> to vector<2x16x256xi1>
    %217 = arith.select %216, %212, %209 : vector<2x16x256xi1>, vector<2x16x256xf32>
    %218 = vector.extract_strided_slice %217 {offsets = [0, 0, 240], sizes = [2, 16, 16], strides = [1, 1, 1]} : vector<2x16x256xf32> to vector<2x16x16xf32>
    %219 = vector.extract_strided_slice %217 {offsets = [0, 0, 0], sizes = [2, 16, 240], strides = [1, 1, 1]} : vector<2x16x256xf32> to vector<2x16x240xf32>
    %220 = tpu.concatenate %218, %219 in 2 : vector<2x16x16xf32>, vector<2x16x240xf32> -> vector<2x16x256xf32>
    %c1_i32_55 = arith.constant 1 : i32
    %221 = vector.broadcast %c1_i32_55 : i32 to vector<1x1x256xi32>
    %222 = arith.cmpi sge, %1, %221 : vector<1x1x256xi32>
    %cst_56 = arith.constant 0.000000e+00 : f32
    %223 = vector.shape_cast %222 : vector<1x1x256xi1> to vector<1x1x256xi1>
    %224 = vector.broadcast %223 : vector<1x1x256xi1> to vector<2x16x256xi1>
    %225 = vector.broadcast %cst_56 : f32 to vector<2x16x256xf32>
    %226 = arith.select %224, %220, %225 : vector<2x16x256xi1>, vector<2x16x256xf32>
    %227 = vector.extract_strided_slice %206 {offsets = [0, 0, 240], sizes = [2, 16, 16], strides = [1, 1, 1]} : vector<2x16x256xf32> to vector<2x16x16xf32>
    %228 = vector.extract_strided_slice %206 {offsets = [0, 0, 0], sizes = [2, 16, 240], strides = [1, 1, 1]} : vector<2x16x256xf32> to vector<2x16x240xf32>
    %229 = tpu.concatenate %227, %228 in 2 : vector<2x16x16xf32>, vector<2x16x240xf32> -> vector<2x16x256xf32>
    %c1_i32_57 = arith.constant 1 : i32
    %230 = vector.broadcast %c1_i32_57 : i32 to vector<1x1x256xi32>
    %231 = arith.cmpi sge, %1, %230 : vector<1x1x256xi32>
    %cst_58 = arith.constant 0.000000e+00 : f32
    %232 = vector.shape_cast %231 : vector<1x1x256xi1> to vector<1x1x256xi1>
    %233 = vector.broadcast %232 : vector<1x1x256xi1> to vector<2x16x256xi1>
    %234 = vector.broadcast %cst_58 : f32 to vector<2x16x256xf32>
    %235 = arith.select %233, %229, %234 : vector<2x16x256xi1>, vector<2x16x256xf32>
    %236 = vector.extract_strided_slice %206 {offsets = [0, 0, 1], sizes = [2, 16, 255], strides = [1, 1, 1]} : vector<2x16x256xf32> to vector<2x16x255xf32>
    %237 = vector.extract_strided_slice %206 {offsets = [0, 0, 0], sizes = [2, 16, 1], strides = [1, 1, 1]} : vector<2x16x256xf32> to vector<2x16x1xf32>
    %238 = tpu.concatenate %236, %237 in 2 : vector<2x16x255xf32>, vector<2x16x1xf32> -> vector<2x16x256xf32>
    %239 = vector.extract_strided_slice %206 {offsets = [0, 0, 241], sizes = [2, 16, 15], strides = [1, 1, 1]} : vector<2x16x256xf32> to vector<2x16x15xf32>
    %240 = vector.extract_strided_slice %206 {offsets = [0, 0, 0], sizes = [2, 16, 241], strides = [1, 1, 1]} : vector<2x16x256xf32> to vector<2x16x241xf32>
    %241 = tpu.concatenate %239, %240 in 2 : vector<2x16x15xf32>, vector<2x16x241xf32> -> vector<2x16x256xf32>
    %c15_i32_59 = arith.constant 15 : i32
    %242 = vector.broadcast %c15_i32_59 : i32 to vector<1x1x256xi32>
    %243 = arith.cmpi sge, %0, %242 : vector<1x1x256xi32>
    %244 = vector.shape_cast %243 : vector<1x1x256xi1> to vector<1x1x256xi1>
    %245 = vector.broadcast %244 : vector<1x1x256xi1> to vector<2x16x256xi1>
    %246 = arith.select %245, %241, %238 : vector<2x16x256xi1>, vector<2x16x256xf32>
    %247 = vector.extract_strided_slice %246 {offsets = [0, 0, 240], sizes = [2, 16, 16], strides = [1, 1, 1]} : vector<2x16x256xf32> to vector<2x16x16xf32>
    %248 = vector.extract_strided_slice %246 {offsets = [0, 0, 0], sizes = [2, 16, 240], strides = [1, 1, 1]} : vector<2x16x256xf32> to vector<2x16x240xf32>
    %249 = tpu.concatenate %247, %248 in 2 : vector<2x16x16xf32>, vector<2x16x240xf32> -> vector<2x16x256xf32>
    %c1_i32_60 = arith.constant 1 : i32
    %250 = vector.broadcast %c1_i32_60 : i32 to vector<1x1x256xi32>
    %251 = arith.cmpi sge, %1, %250 : vector<1x1x256xi32>
    %cst_61 = arith.constant 0.000000e+00 : f32
    %252 = vector.shape_cast %251 : vector<1x1x256xi1> to vector<1x1x256xi1>
    %253 = vector.broadcast %252 : vector<1x1x256xi1> to vector<2x16x256xi1>
    %254 = vector.broadcast %cst_61 : f32 to vector<2x16x256xf32>
    %255 = arith.select %253, %249, %254 : vector<2x16x256xi1>, vector<2x16x256xf32>
    %256 = vector.extract_strided_slice %206 {offsets = [0, 0, 255], sizes = [2, 16, 1], strides = [1, 1, 1]} : vector<2x16x256xf32> to vector<2x16x1xf32>
    %257 = vector.extract_strided_slice %206 {offsets = [0, 0, 0], sizes = [2, 16, 255], strides = [1, 1, 1]} : vector<2x16x256xf32> to vector<2x16x255xf32>
    %258 = tpu.concatenate %256, %257 in 2 : vector<2x16x1xf32>, vector<2x16x255xf32> -> vector<2x16x256xf32>
    %259 = vector.extract_strided_slice %206 {offsets = [0, 0, 15], sizes = [2, 16, 241], strides = [1, 1, 1]} : vector<2x16x256xf32> to vector<2x16x241xf32>
    %260 = vector.extract_strided_slice %206 {offsets = [0, 0, 0], sizes = [2, 16, 15], strides = [1, 1, 1]} : vector<2x16x256xf32> to vector<2x16x15xf32>
    %261 = tpu.concatenate %259, %260 in 2 : vector<2x16x241xf32>, vector<2x16x15xf32> -> vector<2x16x256xf32>
    %c1_i32_62 = arith.constant 1 : i32
    %262 = vector.broadcast %c1_i32_62 : i32 to vector<1x1x256xi32>
    %263 = arith.cmpi slt, %0, %262 : vector<1x1x256xi32>
    %264 = vector.shape_cast %263 : vector<1x1x256xi1> to vector<1x1x256xi1>
    %265 = vector.broadcast %264 : vector<1x1x256xi1> to vector<2x16x256xi1>
    %266 = arith.select %265, %261, %258 : vector<2x16x256xi1>, vector<2x16x256xf32>
    %267 = vector.extract_strided_slice %206 {offsets = [0, 0, 1], sizes = [2, 16, 255], strides = [1, 1, 1]} : vector<2x16x256xf32> to vector<2x16x255xf32>
    %268 = vector.extract_strided_slice %206 {offsets = [0, 0, 0], sizes = [2, 16, 1], strides = [1, 1, 1]} : vector<2x16x256xf32> to vector<2x16x1xf32>
    %269 = tpu.concatenate %267, %268 in 2 : vector<2x16x255xf32>, vector<2x16x1xf32> -> vector<2x16x256xf32>
    %270 = vector.extract_strided_slice %206 {offsets = [0, 0, 241], sizes = [2, 16, 15], strides = [1, 1, 1]} : vector<2x16x256xf32> to vector<2x16x15xf32>
    %271 = vector.extract_strided_slice %206 {offsets = [0, 0, 0], sizes = [2, 16, 241], strides = [1, 1, 1]} : vector<2x16x256xf32> to vector<2x16x241xf32>
    %272 = tpu.concatenate %270, %271 in 2 : vector<2x16x15xf32>, vector<2x16x241xf32> -> vector<2x16x256xf32>
    %c15_i32_63 = arith.constant 15 : i32
    %273 = vector.broadcast %c15_i32_63 : i32 to vector<1x1x256xi32>
    %274 = arith.cmpi sge, %0, %273 : vector<1x1x256xi32>
    %275 = vector.shape_cast %274 : vector<1x1x256xi1> to vector<1x1x256xi1>
    %276 = vector.broadcast %275 : vector<1x1x256xi1> to vector<2x16x256xi1>
    %277 = arith.select %276, %272, %269 : vector<2x16x256xi1>, vector<2x16x256xf32>
    %278 = vector.extract_strided_slice %206 {offsets = [0, 0, 255], sizes = [2, 16, 1], strides = [1, 1, 1]} : vector<2x16x256xf32> to vector<2x16x1xf32>
    %279 = vector.extract_strided_slice %206 {offsets = [0, 0, 0], sizes = [2, 16, 255], strides = [1, 1, 1]} : vector<2x16x256xf32> to vector<2x16x255xf32>
    %280 = tpu.concatenate %278, %279 in 2 : vector<2x16x1xf32>, vector<2x16x255xf32> -> vector<2x16x256xf32>
    %281 = vector.extract_strided_slice %206 {offsets = [0, 0, 15], sizes = [2, 16, 241], strides = [1, 1, 1]} : vector<2x16x256xf32> to vector<2x16x241xf32>
    %282 = vector.extract_strided_slice %206 {offsets = [0, 0, 0], sizes = [2, 16, 15], strides = [1, 1, 1]} : vector<2x16x256xf32> to vector<2x16x15xf32>
    %283 = tpu.concatenate %281, %282 in 2 : vector<2x16x241xf32>, vector<2x16x15xf32> -> vector<2x16x256xf32>
    %c1_i32_64 = arith.constant 1 : i32
    %284 = vector.broadcast %c1_i32_64 : i32 to vector<1x1x256xi32>
    %285 = arith.cmpi slt, %0, %284 : vector<1x1x256xi32>
    %286 = vector.shape_cast %285 : vector<1x1x256xi1> to vector<1x1x256xi1>
    %287 = vector.broadcast %286 : vector<1x1x256xi1> to vector<2x16x256xi1>
    %288 = arith.select %287, %283, %280 : vector<2x16x256xi1>, vector<2x16x256xf32>
    %289 = vector.extract_strided_slice %288 {offsets = [0, 0, 16], sizes = [2, 16, 240], strides = [1, 1, 1]} : vector<2x16x256xf32> to vector<2x16x240xf32>
    %290 = vector.extract_strided_slice %288 {offsets = [0, 0, 0], sizes = [2, 16, 16], strides = [1, 1, 1]} : vector<2x16x256xf32> to vector<2x16x16xf32>
    %291 = tpu.concatenate %289, %290 in 2 : vector<2x16x240xf32>, vector<2x16x16xf32> -> vector<2x16x256xf32>
    %c15_i32_65 = arith.constant 15 : i32
    %292 = vector.broadcast %c15_i32_65 : i32 to vector<1x1x256xi32>
    %293 = arith.cmpi slt, %1, %292 : vector<1x1x256xi32>
    %cst_66 = arith.constant 0.000000e+00 : f32
    %294 = vector.shape_cast %293 : vector<1x1x256xi1> to vector<1x1x256xi1>
    %295 = vector.broadcast %294 : vector<1x1x256xi1> to vector<2x16x256xi1>
    %296 = vector.broadcast %cst_66 : f32 to vector<2x16x256xf32>
    %297 = arith.select %295, %291, %296 : vector<2x16x256xi1>, vector<2x16x256xf32>
    %298 = vector.extract_strided_slice %206 {offsets = [0, 0, 16], sizes = [2, 16, 240], strides = [1, 1, 1]} : vector<2x16x256xf32> to vector<2x16x240xf32>
    %299 = vector.extract_strided_slice %206 {offsets = [0, 0, 0], sizes = [2, 16, 16], strides = [1, 1, 1]} : vector<2x16x256xf32> to vector<2x16x16xf32>
    %300 = tpu.concatenate %298, %299 in 2 : vector<2x16x240xf32>, vector<2x16x16xf32> -> vector<2x16x256xf32>
    %c15_i32_67 = arith.constant 15 : i32
    %301 = vector.broadcast %c15_i32_67 : i32 to vector<1x1x256xi32>
    %302 = arith.cmpi slt, %1, %301 : vector<1x1x256xi32>
    %cst_68 = arith.constant 0.000000e+00 : f32
    %303 = vector.shape_cast %302 : vector<1x1x256xi1> to vector<1x1x256xi1>
    %304 = vector.broadcast %303 : vector<1x1x256xi1> to vector<2x16x256xi1>
    %305 = vector.broadcast %cst_68 : f32 to vector<2x16x256xf32>
    %306 = arith.select %304, %300, %305 : vector<2x16x256xi1>, vector<2x16x256xf32>
    %307 = vector.extract_strided_slice %206 {offsets = [0, 0, 1], sizes = [2, 16, 255], strides = [1, 1, 1]} : vector<2x16x256xf32> to vector<2x16x255xf32>
    %308 = vector.extract_strided_slice %206 {offsets = [0, 0, 0], sizes = [2, 16, 1], strides = [1, 1, 1]} : vector<2x16x256xf32> to vector<2x16x1xf32>
    %309 = tpu.concatenate %307, %308 in 2 : vector<2x16x255xf32>, vector<2x16x1xf32> -> vector<2x16x256xf32>
    %310 = vector.extract_strided_slice %206 {offsets = [0, 0, 241], sizes = [2, 16, 15], strides = [1, 1, 1]} : vector<2x16x256xf32> to vector<2x16x15xf32>
    %311 = vector.extract_strided_slice %206 {offsets = [0, 0, 0], sizes = [2, 16, 241], strides = [1, 1, 1]} : vector<2x16x256xf32> to vector<2x16x241xf32>
    %312 = tpu.concatenate %310, %311 in 2 : vector<2x16x15xf32>, vector<2x16x241xf32> -> vector<2x16x256xf32>
    %c15_i32_69 = arith.constant 15 : i32
    %313 = vector.broadcast %c15_i32_69 : i32 to vector<1x1x256xi32>
    %314 = arith.cmpi sge, %0, %313 : vector<1x1x256xi32>
    %315 = vector.shape_cast %314 : vector<1x1x256xi1> to vector<1x1x256xi1>
    %316 = vector.broadcast %315 : vector<1x1x256xi1> to vector<2x16x256xi1>
    %317 = arith.select %316, %312, %309 : vector<2x16x256xi1>, vector<2x16x256xf32>
    %318 = vector.extract_strided_slice %317 {offsets = [0, 0, 16], sizes = [2, 16, 240], strides = [1, 1, 1]} : vector<2x16x256xf32> to vector<2x16x240xf32>
    %319 = vector.extract_strided_slice %317 {offsets = [0, 0, 0], sizes = [2, 16, 16], strides = [1, 1, 1]} : vector<2x16x256xf32> to vector<2x16x16xf32>
    %320 = tpu.concatenate %318, %319 in 2 : vector<2x16x240xf32>, vector<2x16x16xf32> -> vector<2x16x256xf32>
    %c15_i32_70 = arith.constant 15 : i32
    %321 = vector.broadcast %c15_i32_70 : i32 to vector<1x1x256xi32>
    %322 = arith.cmpi slt, %1, %321 : vector<1x1x256xi32>
    %cst_71 = arith.constant 0.000000e+00 : f32
    %323 = vector.shape_cast %322 : vector<1x1x256xi1> to vector<1x1x256xi1>
    %324 = vector.broadcast %323 : vector<1x1x256xi1> to vector<2x16x256xi1>
    %325 = vector.broadcast %cst_71 : f32 to vector<2x16x256xf32>
    %326 = arith.select %324, %320, %325 : vector<2x16x256xi1>, vector<2x16x256xf32>
    %327 = tpu.concatenate %226, %235, %255, %266, %206, %277, %297, %306, %326 in 1 : vector<2x16x256xf32>, vector<2x16x256xf32>, vector<2x16x256xf32>, vector<2x16x256xf32>, vector<2x16x256xf32>, vector<2x16x256xf32>, vector<2x16x256xf32>, vector<2x16x256xf32>, vector<2x16x256xf32> -> vector<2x144x256xf32>
    %c0_72 = arith.constant 0 : index
    %c0_73 = arith.constant 0 : index
    %328 = vector.load %arg7[%c0_72, %c0_73] : memref<16x144xf32, #tpu.memory_space<vmem>>, vector<16x144xf32>
    %c0_74 = arith.constant 0 : index
    %c0_75 = arith.constant 0 : index
    %329 = vector.load %arg8[%c0_74, %c0_75] : memref<16x1xf32, #tpu.memory_space<vmem>>, vector<16x1xf32>
    %330 = vector.extract_strided_slice %327 {offsets = [0, 0, 0], sizes = [1, 144, 256], strides = [1, 1, 1]} : vector<2x144x256xf32> to vector<1x144x256xf32>
    %331 = vector.shape_cast %330 : vector<1x144x256xf32> to vector<144x256xf32>
    %cst_76 = arith.constant dense<0.000000e+00> : vector<16x256xf32>
    %332 = tpu.matmul %328, %331, %cst_76 {dimension_numbers = #tpu.dot_dimension_numbers<[1], [0], [0], [1], [0, 0, 1, 1], [], []>} : vector<16x144xf32>, vector<144x256xf32>, vector<16x256xf32> -> vector<16x256xf32>
    %333 = vector.broadcast %329 : vector<16x1xf32> to vector<16x256xf32>
    %334 = arith.addf %332, %333 : vector<16x256xf32>
    %335 = vector.extract_strided_slice %327 {offsets = [1, 0, 0], sizes = [1, 144, 256], strides = [1, 1, 1]} : vector<2x144x256xf32> to vector<1x144x256xf32>
    %336 = vector.shape_cast %335 : vector<1x144x256xf32> to vector<144x256xf32>
    %cst_77 = arith.constant dense<0.000000e+00> : vector<16x256xf32>
    %337 = tpu.matmul %328, %336, %cst_77 {dimension_numbers = #tpu.dot_dimension_numbers<[1], [0], [0], [1], [0, 0, 1, 1], [], []>} : vector<16x144xf32>, vector<144x256xf32>, vector<16x256xf32> -> vector<16x256xf32>
    %338 = vector.broadcast %329 : vector<16x1xf32> to vector<16x256xf32>
    %339 = arith.addf %337, %338 : vector<16x256xf32>
    %340 = vector.shape_cast %334 : vector<16x256xf32> to vector<1x16x256xf32>
    %341 = vector.shape_cast %339 : vector<16x256xf32> to vector<1x16x256xf32>
    %342 = tpu.concatenate %340, %341 in 0 : vector<1x16x256xf32>, vector<1x16x256xf32> -> vector<2x16x256xf32>
    %cst_78 = arith.constant dense<0.000000e+00> : vector<16xf32>
    %343 = vector.multi_reduction <add>, %342, %cst_78 [0, 2] : vector<2x16x256xf32> to vector<16xf32>
    %344 = vector.shape_cast %343 : vector<16xf32> to vector<1x16x1xf32>
    %cst_79 = arith.constant 0.001953125 : f32
    %345 = vector.broadcast %cst_79 : f32 to vector<1x16x1xf32>
    %346 = arith.mulf %344, %345 : vector<1x16x1xf32>
    %347 = arith.mulf %342, %342 : vector<2x16x256xf32>
    %cst_80 = arith.constant dense<0.000000e+00> : vector<16xf32>
    %348 = vector.multi_reduction <add>, %347, %cst_80 [0, 2] : vector<2x16x256xf32> to vector<16xf32>
    %349 = vector.shape_cast %348 : vector<16xf32> to vector<1x16x1xf32>
    %cst_81 = arith.constant 0.001953125 : f32
    %350 = vector.broadcast %cst_81 : f32 to vector<1x16x1xf32>
    %351 = arith.mulf %349, %350 : vector<1x16x1xf32>
    %352 = arith.mulf %346, %346 : vector<1x16x1xf32>
    %353 = arith.subf %351, %352 : vector<1x16x1xf32>
    %354 = vector.broadcast %346 : vector<1x16x1xf32> to vector<2x16x256xf32>
    %355 = arith.subf %342, %354 : vector<2x16x256xf32>
    %cst_82 = arith.constant 9.99999974E-6 : f32
    %356 = vector.broadcast %cst_82 : f32 to vector<1x16x1xf32>
    %357 = arith.addf %353, %356 : vector<1x16x1xf32>
    %358 = math.rsqrt %357 : vector<1x16x1xf32>
    %359 = vector.broadcast %358 : vector<1x16x1xf32> to vector<2x16x256xf32>
    %360 = arith.mulf %355, %359 : vector<2x16x256xf32>
    %c0_83 = arith.constant 0 : index
    %c0_84 = arith.constant 0 : index
    %361 = vector.load %arg9[%c0_83, %c0_84] : memref<16x1xf32, #tpu.memory_space<vmem>>, vector<16x1xf32>
    %362 = vector.shape_cast %361 : vector<16x1xf32> to vector<1x16x1xf32>
    %363 = vector.broadcast %362 : vector<1x16x1xf32> to vector<2x16x256xf32>
    %364 = arith.mulf %360, %363 : vector<2x16x256xf32>
    %c0_85 = arith.constant 0 : index
    %c0_86 = arith.constant 0 : index
    %365 = vector.load %arg10[%c0_85, %c0_86] : memref<16x1xf32, #tpu.memory_space<vmem>>, vector<16x1xf32>
    %366 = vector.shape_cast %365 : vector<16x1xf32> to vector<1x16x1xf32>
    %367 = vector.broadcast %366 : vector<1x16x1xf32> to vector<2x16x256xf32>
    %368 = arith.addf %364, %367 : vector<2x16x256xf32>
    %cst_87 = arith.constant 0.707106769 : f32
    %369 = vector.broadcast %cst_87 : f32 to vector<2x16x256xf32>
    %370 = arith.mulf %368, %369 : vector<2x16x256xf32>
    %371 = math.absf %370 : vector<2x16x256xf32>
    %cst_88 = arith.constant 0.327591091 : f32
    %372 = vector.broadcast %cst_88 : f32 to vector<2x16x256xf32>
    %373 = arith.mulf %372, %371 : vector<2x16x256xf32>
    %cst_89 = arith.constant 1.000000e+00 : f32
    %374 = vector.broadcast %cst_89 : f32 to vector<2x16x256xf32>
    %375 = arith.addf %374, %373 : vector<2x16x256xf32>
    %cst_90 = arith.constant 1.000000e+00 : f32
    %376 = vector.broadcast %cst_90 : f32 to vector<2x16x256xf32>
    %377 = arith.divf %376, %375 : vector<2x16x256xf32>
    %cst_91 = arith.constant 1.06140542 : f32
    %378 = vector.broadcast %cst_91 : f32 to vector<2x16x256xf32>
    %379 = arith.mulf %377, %378 : vector<2x16x256xf32>
    %cst_92 = arith.constant -1.45315206 : f32
    %380 = vector.broadcast %cst_92 : f32 to vector<2x16x256xf32>
    %381 = arith.addf %380, %379 : vector<2x16x256xf32>
    %382 = arith.mulf %377, %381 : vector<2x16x256xf32>
    %cst_93 = arith.constant 1.42141378 : f32
    %383 = vector.broadcast %cst_93 : f32 to vector<2x16x256xf32>
    %384 = arith.addf %383, %382 : vector<2x16x256xf32>
    %385 = arith.mulf %377, %384 : vector<2x16x256xf32>
    %cst_94 = arith.constant -0.284496725 : f32
    %386 = vector.broadcast %cst_94 : f32 to vector<2x16x256xf32>
    %387 = arith.addf %386, %385 : vector<2x16x256xf32>
    %388 = arith.mulf %377, %387 : vector<2x16x256xf32>
    %cst_95 = arith.constant 0.254829586 : f32
    %389 = vector.broadcast %cst_95 : f32 to vector<2x16x256xf32>
    %390 = arith.addf %389, %388 : vector<2x16x256xf32>
    %391 = arith.mulf %377, %390 : vector<2x16x256xf32>
    %cst_96 = arith.constant 0.000000e+00 : f32
    %392 = vector.broadcast %cst_96 : f32 to vector<2x16x256xf32>
    %393 = arith.subf %392, %371 : vector<2x16x256xf32>
    %394 = arith.mulf %393, %371 : vector<2x16x256xf32>
    %395 = math.exp %394 : vector<2x16x256xf32>
    %396 = arith.mulf %391, %395 : vector<2x16x256xf32>
    %cst_97 = arith.constant 1.000000e+00 : f32
    %397 = vector.broadcast %cst_97 : f32 to vector<2x16x256xf32>
    %398 = arith.subf %397, %396 : vector<2x16x256xf32>
    %cst_98 = arith.constant 0.000000e+00 : f32
    %399 = vector.broadcast %cst_98 : f32 to vector<2x16x256xf32>
    %400 = arith.cmpf oge, %370, %399 : vector<2x16x256xf32>
    %cst_99 = arith.constant 0.000000e+00 : f32
    %401 = vector.broadcast %cst_99 : f32 to vector<2x16x256xf32>
    %402 = arith.subf %401, %398 : vector<2x16x256xf32>
    %403 = arith.select %400, %398, %402 : vector<2x16x256xi1>, vector<2x16x256xf32>
    %cst_100 = arith.constant 5.000000e-01 : f32
    %404 = vector.broadcast %cst_100 : f32 to vector<2x16x256xf32>
    %405 = arith.mulf %404, %368 : vector<2x16x256xf32>
    %cst_101 = arith.constant 1.000000e+00 : f32
    %406 = vector.broadcast %cst_101 : f32 to vector<2x16x256xf32>
    %407 = arith.addf %406, %403 : vector<2x16x256xf32>
    %408 = arith.mulf %405, %407 : vector<2x16x256xf32>
    %cst_102 = arith.constant 1.000000e+00 : f32
    %409 = vector.broadcast %cst_102 : f32 to vector<2x16x256xf32>
    %410 = arith.minimumf %408, %409 : vector<2x16x256xf32>
    %c0_103 = arith.constant 0 : index
    %c0_104 = arith.constant 0 : index
    %411 = vector.load %arg11[%c0_103, %c0_104] : memref<2x20xf32, #tpu.memory_space<vmem>>, vector<2x20xf32>
    %c0_105 = arith.constant 0 : index
    %c0_106 = arith.constant 0 : index
    %412 = vector.load %arg12[%c0_105, %c0_106] : memref<2x1xf32, #tpu.memory_space<vmem>>, vector<2x1xf32>
    %413 = vector.extract_strided_slice %410 {offsets = [0, 0, 0], sizes = [1, 16, 256], strides = [1, 1, 1]} : vector<2x16x256xf32> to vector<1x16x256xf32>
    %414 = vector.shape_cast %413 : vector<1x16x256xf32> to vector<16x256xf32>
    %c0_107 = arith.constant 0 : index
    %c0_108 = arith.constant 0 : index
    %c0_109 = arith.constant 0 : index
    %415 = vector.load %arg2[%c0_107, %c0_108, %c0_109] : memref<2x4x256xf32, #tpu.memory_space<vmem>>, vector<1x4x256xf32>
    %416 = vector.shape_cast %415 : vector<1x4x256xf32> to vector<4x256xf32>
    %417 = tpu.concatenate %414, %416 in 0 : vector<16x256xf32>, vector<4x256xf32> -> vector<20x256xf32>
    %cst_110 = arith.constant dense<0.000000e+00> : vector<2x256xf32>
    %418 = tpu.matmul %411, %417, %cst_110 {dimension_numbers = #tpu.dot_dimension_numbers<[1], [0], [0], [1], [0, 0, 1, 1], [], []>} : vector<2x20xf32>, vector<20x256xf32>, vector<2x256xf32> -> vector<2x256xf32>
    %419 = vector.broadcast %412 : vector<2x1xf32> to vector<2x256xf32>
    %420 = arith.addf %418, %419 : vector<2x256xf32>
    %c0_111 = arith.constant 0 : index
    %c0_112 = arith.constant 0 : index
    %c0_113 = arith.constant 0 : index
    %421 = vector.load %arg13[%c0_111, %c0_112, %c0_113] : memref<2x2x256xf32, #tpu.memory_space<vmem>>, vector<1x2x256xf32>
    %422 = vector.shape_cast %421 : vector<1x2x256xf32> to vector<2x256xf32>
    %423 = vector.shape_cast %420 : vector<2x256xf32> to vector<1x2x256xf32>
    tpu.vector_store %arg13[%c0_111, %c0_112, %c0_113], %423 {strides = array<i32>} : memref<2x2x256xf32, #tpu.memory_space<vmem>>, vector<1x2x256xf32>,
    %424 = vector.extract_strided_slice %410 {offsets = [1, 0, 0], sizes = [1, 16, 256], strides = [1, 1, 1]} : vector<2x16x256xf32> to vector<1x16x256xf32>
    %425 = vector.shape_cast %424 : vector<1x16x256xf32> to vector<16x256xf32>
    %c1 = arith.constant 1 : index
    %c0_114 = arith.constant 0 : index
    %c0_115 = arith.constant 0 : index
    %426 = vector.load %arg2[%c1, %c0_114, %c0_115] : memref<2x4x256xf32, #tpu.memory_space<vmem>>, vector<1x4x256xf32>
    %427 = vector.shape_cast %426 : vector<1x4x256xf32> to vector<4x256xf32>
    %428 = tpu.concatenate %425, %427 in 0 : vector<16x256xf32>, vector<4x256xf32> -> vector<20x256xf32>
    %cst_116 = arith.constant dense<0.000000e+00> : vector<2x256xf32>
    %429 = tpu.matmul %411, %428, %cst_116 {dimension_numbers = #tpu.dot_dimension_numbers<[1], [0], [0], [1], [0, 0, 1, 1], [], []>} : vector<2x20xf32>, vector<20x256xf32>, vector<2x256xf32> -> vector<2x256xf32>
    %430 = vector.broadcast %412 : vector<2x1xf32> to vector<2x256xf32>
    %431 = arith.addf %429, %430 : vector<2x256xf32>
    %c1_117 = arith.constant 1 : index
    %c0_118 = arith.constant 0 : index
    %c0_119 = arith.constant 0 : index
    %432 = vector.load %arg13[%c1_117, %c0_118, %c0_119] : memref<2x2x256xf32, #tpu.memory_space<vmem>>, vector<1x2x256xf32>
    %433 = vector.shape_cast %432 : vector<1x2x256xf32> to vector<2x256xf32>
    %434 = vector.shape_cast %431 : vector<2x256xf32> to vector<1x2x256xf32>
    tpu.vector_store %arg13[%c1_117, %c0_118, %c0_119], %434 {strides = array<i32>} : memref<2x2x256xf32, #tpu.memory_space<vmem>>, vector<1x2x256xf32>,
    return
  }
}

</mosaic_0001>

<bundles_post_ra>
// kernel: tpu_custom_call.1
= control target key start
LH: loop header
LB: loop body
LE: loop exit
PB: predicated region body
PF: predicated region fallthrough
CT: control target
= control target key end

     0   :  { %s2618_s27 = smov 127   ;;  %v2619_v3 = vmov 0   ;;  %s3867_s0 = inlined_call_operand.vmem [shape: s32[1,1,256], index: 0, kind: input, shape index: {}]   ;;  %s3868_s1 = inlined_call_operand.vmem [shape: s32[1,1,256], index: 1, kind: input, shape index: {}]   ;;  %s3869_s2 = inlined_call_operand.vmem [shape: f32[2,4,256], index: 2, kind: input, shape index: {}]   ;;  %s3870_s3 = inlined_call_operand.vmem [shape: f32[16,36], index: 3, kind: input, shape index: {}]   ;;  %s3871_s4 = inlined_call_operand.vmem [shape: f32[16,1], index: 4, kind: input, shape index: {}]   ;;  %s3872_s5 = inlined_call_operand.vmem [shape: f32[16,1], index: 5, kind: input, shape index: {}]   ;;  %s3873_s6 = inlined_call_operand.vmem [shape: f32[16,1], index: 6, kind: input, shape index: {}]   ;;  %s3874_s7 = inlined_call_operand.vmem [shape: f32[16,144], index: 7, kind: input, shape index: {}]   ;;  %s3875_s8 = inlined_call_operand.vmem [shape: f32[16,1], index: 8, kind: input, shape index: {}]   ;;  %s3876_s9 = inlined_call_operand.vmem [shape: f32[16,1], index: 9, kind: input, shape index: {}]   ;;  %s3877_s10 = inlined_call_operand.vmem [shape: f32[16,1], index: 10, kind: input, shape index: {}]   ;;  %s3878_s11 = inlined_call_operand.vmem [shape: f32[2,20], index: 11, kind: input, shape index: {}]   ;;  %s3879_s12 = inlined_call_operand.vmem [shape: f32[2,1], index: 12, kind: input, shape index: {}]   ;;  %s3880_s13 = inlined_call_operand.hbm [shape: f32[2,2,256], index: 13, kind: output, shape index: {}]  }
   0x1   :  { %v2702_v0 = vld [vmem:[%s3869_s2] sm:$0xff]  ;;  %v2713_v2 = vld [vmem:[%s3869_s2 + $0x8] sm:$0xff]  ;;  %2316 = vset.pattern.permute.xlu0 %v2619_v3  ;;  %2317 = vset.pattern.permute.xlu1 %v2619_v3 }
   0x2   :  { %168 = vrot.lane.b32.xlu1 %v2702_v0, %s2618_s27  ;;  %v2708_v1 = vcombine.high %v2702_v0, %v2702_v0 }
   0x4   :  { %v2246_v4 = vpack.i.bf16 %v2702_v0, %v2708_v1 }
   0x5   :  { %18 = vsyncpa [#allocation3], 0  ;;  %s2620_s30 = smov 1   ;;  %v2251_v5 = vpack.i.bf16 %v2708_v1, %v2702_v0  ;;  %v2726_v6 = vcombine.high %v2713_v2, %v2713_v2  ;;  %s2621_s14 = smov 113   ;;  %v93_v9 = vlaneseq  ;;  %v45_v10 = vld [vmem:[%s3867_s0] sm:$0x3] }
   0x6   :  { %170 = vrot.lane.b32.xlu1 %v2708_v1, %s2618_s27  ;;  %2247 = vrot.lane.b32.xlu0 %v2246_v4, %s2620_s30  ;;  %s2622_s15 = smov 15   ;;  %s2623_s16 = smov 16   ;;  %vm91_vm0 = vcmp.lt.s32.totalorder %v45_v10, 1  ;;  %vm206_vm1 = vcmp.ge.s32.totalorder %v45_v10, 15  ;;  %vm176_vm2 = vcmask 1039360   ;;  %vm63_vm3 = vcmask 7168  }
   0x7   :  { %v2733_v7 = vpack.i.bf16 %v2726_v6, %v2713_v2  ;;  %v2256_v8 = vpack.i.bf16 %v2713_v2, %v2726_v6  ;;  %s2624_s17 = smov 112   ;;  %v94_v11 = vshrl.u32 %v93_v9, 7  ;;  %v92_v15 = vsel %vm91_vm0, 1, %v2619_v3 }
   0x8   :  { %v207_v16 = vsel %vm206_vm1, 1, %v2619_v3  ;;  %vm80_vm4 = vcmask 924672   ;;  %vm197_vm7 = vcmask 121856   ;;  %vm3883_vm12 = vcmask 130048  }
   0x9   :  { %v2756_v13 = vsub.s32 0, %v94_v11  ;;  %v2758_v14 = vsub.s32 1, %v94_v11  ;;  %vm3882_vm15 = vcmask 916480  }
   0xa   :  { %2252 = vrot.lane.b32.xlu0 %v2251_v5, %s2621_s14  ;;  %193 = vrot.lane.b32.xlu1 %v2702_v0, %s2622_s15 }
   0xb   :  { %v96_v19 = vrot.slane %v92_v15, %v2756_v13  ;;  %v100_v20 = vrot.slane %v92_v15, %v2758_v14  ;;  %v211_v21 = vrot.slane %v207_v16, %v2756_v13  ;;  %v215_v22 = vrot.slane %v207_v16, %v2758_v14 }
   0xd   :  { %vm2766_vm5 = vcmp.eq.s32.totalorder %v96_v19, 1  ;;  %vm2770_vm6 = vcmp.eq.s32.totalorder %v100_v20, 1  ;;  %vm2774_vm8 = vcmp.eq.s32.totalorder %v211_v21, 1  ;;  %vm2778_vm9 = vcmp.eq.s32.totalorder %v215_v22, 1  ;;  %v389_v19 = vld [vmem:[%s3871_s4 + $0x8] sm:$0xff]  ;;  %v629_v21 = vld [vmem:[%s3872_s5] sm:$0xff] }
   0xe   :  { %187 = vrot.lane.b32.xlu0 %v2708_v1, %s2622_s15  ;;  %2262 = vrot.lane.b32.xlu1 %v2733_v7, %s2621_s14  ;;  %v630_v20 = vld [vmem:[%s3872_s5 + $0x8] sm:$0xff]  ;;  %v46_v22 = vld [vmem:[%s3868_s1] sm:$0x3] }
   0xf   :  { %vm130_vm10 = vcmp.ge.s32.totalorder %v46_v22, 1  ;;  %vm267_vm11 = vcmp.lt.s32.totalorder %v46_v22, 15 }
  0x12   :  { %2257 = vrot.lane.b32.xlu0 %v2256_v8, %s2620_s30  ;;  %174 = vrot.lane.b32.xlu1 %v2726_v6, %s2618_s27 }
  0x16   :  { %172 = vrot.lane.b32.xlu0 %v2713_v2, %s2618_s27  ;;  %195 = vrot.lane.b32.xlu1 %v2713_v2, %s2622_s15 }
  0x1a   :  { %189 = vrot.lane.b32.xlu0 %v2726_v6, %s2622_s15  ;;  %2272 = vrot.lane.b32.xlu1 %v2256_v8, %s2623_s16 }
  0x1e   :  { %2267 = vrot.lane.b32.xlu0 %v2246_v4, %s2623_s16 }
  0x22   :  { %2277 = vrot.lane.b32.xlu0 %v2251_v5, %s2624_s17 }
  0x74   :  { %v169_v12 = vpop.permute.xlu1 %168 }
  0x78   :  { %v171_v17 = vpop.permute.xlu1 %170  ;;  %v2248_v18 = vpop.permute.xlu0 %2247 }
  0x79   :  { %v2250_v23 = vunpack.i.h.bf16 %v2248_v18  ;;  %v2249_v24 = vunpack.i.l.bf16 %v2248_v18  ;;  %v177_v37 = vsel %vm176_vm2, %v169_v12, %v171_v17  ;;  %v185_v38 = vsel %vm176_vm2, %v171_v17, %v169_v12 }
  0x7a   :  { %v2625_v18 = vmov 0.0  }
  0x7b   :  { %v64_v33 = vsel %vm63_vm3, %v2250_v23, %v2249_v24  ;;  %v70_v34 = vsel %vm63_vm3, %v2249_v24, %v2250_v23  ;;  %477 = vmatprep.mubr.f32.mxu0 %v2625_v18  ;;  %560 = vmatprep.mubr.f32.mxu1 %v2625_v18  ;;  %v131_v23 = vsel %vm130_vm10, 1, %v2619_v3  ;;  %vm3881_vm10 = vcmask 1043456  }
  0x7c   :  { %v2253_v25 = vpop.permute.xlu0 %2252  ;;  %v194_v26 = vpop.permute.xlu1 %193 }
  0x7d   :  { %v2255_v27 = vunpack.i.h.bf16 %v2253_v25  ;;  %v2254_v28 = vunpack.i.l.bf16 %v2253_v25  ;;  %v268_v25 = vsel %vm267_vm11, 1, %v2619_v3  ;;  %vm400_vm11 = vcmask 293888  }
  0x7f   :  { %v81_v35 = vsel %vm80_vm4, %v2254_v28, %v2255_v27  ;;  %v89_v36 = vsel %vm80_vm4, %v2255_v27, %v2254_v28  ;;  %v139_v28 = vrot.slane %v131_v23, %v2758_v14 }
  0x80   :  { %v188_v39 = vpop.permute.xlu0 %187  ;;  %v2790_v40 = vsel %vm2766_vm5, %v81_v35, %v70_v34  ;;  %v2794_v41 = vsel %vm2770_vm6, %v89_v36, %v64_v33  ;;  %v2263_v42 = vpop.permute.xlu1 %2262  ;;  %v135_v33 = vrot.slane %v131_v23, %v2756_v13  ;;  %v272_v35 = vrot.slane %v268_v25, %v2756_v13 }
  0x81   :  { %v198_v43 = vsel %vm197_vm7, %v194_v26, %v188_v39  ;;  %v204_v44 = vsel %vm197_vm7, %v188_v39, %v194_v26  ;;  %v2281_v45 = vpack.i.bf16 %v2790_v40, %v2794_v41  ;;  %v2265_v46 = vunpack.i.h.bf16 %v2263_v42 }
  0x82   :  { %v2802_v47 = vsel %vm2774_vm8, %v204_v44, %v177_v37  ;;  %v2806_v48 = vsel %vm2778_vm9, %v198_v43, %v185_v38  ;;  %v2264_v49 = vunpack.i.l.bf16 %v2263_v42  ;;  %v2306_v5 = vpack.i.bf16 %v2794_v41, %v2790_v40 }
  0x83   :  { %2282 = vrot.lane.b32.xlu1 %v2281_v45, %s2623_s16  ;;  %v2286_v50 = vpack.i.bf16 %v2802_v47, %v2806_v48  ;;  %v276_v36 = vrot.slane %v268_v25, %v2758_v14  ;;  %vm2883_vm13 = vcmp.eq.s32.totalorder %v139_v28, 1  ;;  %vm2887_vm14 = vcmp.eq.s32.totalorder %v135_v33, 1 }
  0x84   :  { %v2258_v51 = vpop.permute.xlu0 %2257  ;;  %v175_v52 = vpop.permute.xlu1 %174  ;;  %v82_v53 = vsel %vm80_vm4, %v2264_v49, %v2265_v46  ;;  %v90_v54 = vsel %vm80_vm4, %v2265_v46, %v2264_v49  ;;  %vm2895_vm0 = vcmp.eq.s32.totalorder %v272_v35, 1  ;;  %v349_v46 = vrot.slane %v2802_v47, 4 }
  0x85   :  { %v2260_v55 = vunpack.i.h.bf16 %v2258_v51  ;;  %v2259_v56 = vunpack.i.l.bf16 %v2258_v51  ;;  %2287 = vrot.lane.b32.xlu0 %v2286_v50, %s2623_s16  ;;  %vm2899_vm1 = vcmp.eq.s32.totalorder %v276_v36, 1  ;;  %v350_v49 = vrot.slane %v2806_v48, 4 }
  0x87   :  { %v65_v57 = vsel %vm63_vm3, %v2260_v55, %v2259_v56  ;;  %v71_v58 = vsel %vm63_vm3, %v2259_v56, %v2260_v55 }
  0x88   :  { %v173_v59 = vpop.permute.xlu0 %172  ;;  %v2818_v60 = vsel %vm2766_vm5, %v82_v53, %v71_v58  ;;  %v2822_v61 = vsel %vm2770_vm6, %v90_v54, %v65_v57  ;;  %v196_v63 = vpop.permute.xlu1 %195 }
  0x89   :  { %v2291_v62 = vpack.i.bf16 %v2818_v60, %v2822_v61  ;;  %v178_v8 = vsel %vm176_vm2, %v173_v59, %v175_v52  ;;  %v186_v9 = vsel %vm176_vm2, %v175_v52, %v173_v59  ;;  %v2311_v17 = vpack.i.bf16 %v2822_v61, %v2818_v60 }
  0x8b   :  { %2292 = vrot.lane.b32.xlu1 %v2291_v62, %s2623_s16 }
  0x8c   :  { %v190_v4 = vpop.permute.xlu0 %189  ;;  %v2273_v34 = vpop.permute.xlu1 %2272 }
  0x8d   :  { %v199_v10 = vsel %vm197_vm7, %v196_v63, %v190_v4  ;;  %v205_v11 = vsel %vm197_vm7, %v190_v4, %v196_v63  ;;  %v2275_v52 = vunpack.i.h.bf16 %v2273_v34  ;;  %v2274_v53 = vunpack.i.l.bf16 %v2273_v34 }
  0x8e   :  { %v2835_v12 = vsel %vm2774_vm8, %v205_v11, %v178_v8  ;;  %v2839_v15 = vsel %vm2778_vm9, %v199_v10, %v186_v9  ;;  %v340_v8 = vrot.slane %v2794_v41, 4  ;;  %v339_v10 = vrot.slane %v2790_v40, 4 }
  0x8f   :  { %2307 = vrot.lane.b32.xlu1 %v2306_v5, %s2624_s17  ;;  %v2296_v16 = vpack.i.bf16 %v2835_v12, %v2839_v15  ;;  %v157_v11 = vsel %vm3883_vm12, %v2275_v52, %v2274_v53  ;;  %v352_v33 = vrot.slane %v2839_v15, 4  ;;  %v379_v34 = vsel %vm3881_vm10, %v2708_v1, %v350_v49 }
  0x90   :  { %v2268_v24 = vpop.permute.xlu0 %2267  ;;  %v167_v28 = vsel %vm2883_vm13, %v157_v11, 0.0  ;;  %v341_v1 = vrot.slane %v2818_v60, 4 }
  0x91   :  { %2297 = vrot.lane.b32.xlu0 %v2296_v16, %s2623_s16  ;;  %v2270_v26 = vunpack.i.h.bf16 %v2268_v24  ;;  %v2269_v27 = vunpack.i.l.bf16 %v2268_v24  ;;  %v163_v16 = vsel %vm3883_vm12, %v2274_v53, %v2275_v52 }
  0x93   :  { %2312 = vrot.lane.b32.xlu1 %v2311_v17, %s2624_s17  ;;  %v156_v37 = vsel %vm3883_vm12, %v2270_v26, %v2269_v27  ;;  %v162_v38 = vsel %vm3883_vm12, %v2269_v27, %v2270_v26 }
  0x94   :  { %v2278_v39 = vpop.permute.xlu0 %2277  ;;  %v165_v43 = vsel %vm2883_vm13, %v156_v37, 0.0  ;;  %v164_v13 = vsel %vm2887_vm14, %v162_v38, 0.0  ;;  %v378_v37 = vsel %vm3881_vm10, %v2702_v0, %v349_v46  ;;  %v166_v38 = vsel %vm2887_vm14, %v163_v16, 0.0 }
  0x95   :  { %2302 = vrot.lane.b32.xlu0 %v2733_v7, %s2624_s17  ;;  %v388_v7 = vld [vmem:[%s3871_s4] sm:$0xff]  ;;  %v332_v55 = vrot.slane %v165_v43, 4  ;;  %v331_v56 = vrot.slane %v164_v13, 4  ;;  %v2280_v63 = vunpack.i.h.bf16 %v2278_v39  ;;  %v2279_v4 = vunpack.i.l.bf16 %v2278_v39 }
  0x96   :  { %v351_v39 = vrot.slane %v2835_v12, 4  ;;  %v334_v43 = vrot.slane %v167_v28, 4  ;;  %v342_v13 = vrot.slane %v2822_v61, 4  ;;  %v333_v46 = vrot.slane %v166_v38, 4 }
  0x97   :  { %307 = vrot.lane.b32.xlu1 %v2806_v48, %s2624_s17  ;;  %v291_v40 = vsel %vm3882_vm15, %v2279_v4, %v2280_v63  ;;  %v299_v22 = vsel %vm3882_vm15, %v2280_v63, %v2279_v4 }
  0x98   :  { %v301_v35 = vsel %vm2895_vm0, %v291_v40, 0.0  ;;  %v302_v36 = vsel %vm2899_vm1, %v299_v22, 0.0 }
  0x99   :  { %305 = vrot.lane.b32.xlu0 %v2802_v47, %s2624_s17  ;;  %v361_v52 = vrot.slane %v301_v35, 4  ;;  %v362_v53 = vrot.slane %v302_v36, 4 }
  0x9b   :  { %311 = vrot.lane.b32.xlu1 %v2839_v15, %s2624_s17 }
  0x9d   :  { %309 = vrot.lane.b32.xlu0 %v2835_v12, %s2624_s17 }
  0x9f   :  { %397 = vperm.xlu1 %2317, %v389_v19  }
  0xa1   :  { %392 = vperm.xlu0 %2316, %v388_v7  }
  0xa3   :  { %638 = vperm.xlu1 %2317, %v630_v20  }
  0xa5   :  { %633 = vperm.xlu0 %2316, %v629_v21  }
  0xf5   :  { %v2283_v45 = vpop.permute.xlu1 %2282 }
  0xf6   :  { %v2285_v50 = vunpack.i.h.bf16 %v2283_v45  ;;  %v2284_v51 = vunpack.i.l.bf16 %v2283_v45 }
  0xf7   :  { %v2288_v54 = vpop.permute.xlu0 %2287 }
  0xf8   :  { %v2290_v57 = vunpack.i.h.bf16 %v2288_v54  ;;  %v2289_v58 = vunpack.i.l.bf16 %v2288_v54  ;;  %v122_v59 = vsel %vm3883_vm12, %v2285_v50, %v2284_v51  ;;  %v128_v62 = vsel %vm3883_vm12, %v2284_v51, %v2285_v50 }
  0xf9   :  { %v143_v47 = vsel %vm2883_vm13, %v122_v59, 0.0  ;;  %v142_v48 = vsel %vm2887_vm14, %v128_v62, 0.0  ;;  %v2947_v54 = vsel %vm3881_vm10, %v2726_v6, %v352_v33 }
  0xfa   :  { %v236_v5 = vsel %vm3883_vm12, %v2290_v57, %v2289_v58  ;;  %v242_v9 = vsel %vm3883_vm12, %v2289_v58, %v2290_v57  ;;  %v371_v7 = vsel %vm3881_vm10, %v143_v47, %v332_v55  ;;  %v370_v41 = vsel %vm3881_vm10, %v142_v48, %v331_v56 }
  0xfb   :  { %v245_v17 = vsel %vm2883_vm13, %v236_v5, 0.0  ;;  %v244_v19 = vsel %vm2887_vm14, %v242_v9, 0.0 }
  0xfc   :  { %v375_v20 = vsel %vm3881_vm10, %v245_v17, %v340_v8  ;;  %v374_v21 = vsel %vm3881_vm10, %v244_v19, %v339_v10 }
  0xfd   :  { %v2293_v23 = vpop.permute.xlu1 %2292  ;;  %v2115_v24 = vpack.c.bf16 %v375_v20, %v371_v7  ;;  %v2117_v25 = vpack.c.bf16 %v374_v21, %v370_v41 }
  0xfe   :  { %v2295_v26 = vunpack.i.h.bf16 %v2293_v23  ;;  %v2294_v27 = vunpack.i.l.bf16 %v2293_v23 }
  0xff   :  { %2116 = vmatprep.subr.bf16.mxu0 %v2115_v24 }
 0x100   :  { %2118 = vmatpush1.bf16.msra.mxu0 %v2117_v25  ;;  %v123_v50 = vsel %vm3883_vm12, %v2295_v26, %v2294_v27  ;;  %v129_v51 = vsel %vm3883_vm12, %v2294_v27, %v2295_v26 }
 0x101   :  { %v2308_v15 = vpop.permute.xlu1 %2307  ;;  %v145_v62 = vsel %vm2883_vm13, %v123_v50, 0.0  ;;  %v144_v6 = vsel %vm2887_vm14, %v129_v51, 0.0  ;;  %v380_v51 = vsel %vm3881_vm10, %v2713_v2, %v351_v39  ;;  %v387_v2 = vld [vmem:[%s3870_s3 + $0x8] sm:$0xff] }
 0x102   :  { %v2310_v45 = vunpack.i.h.bf16 %v2308_v15  ;;  %v2309_v49 = vunpack.i.l.bf16 %v2308_v15  ;;  %v373_v19 = vsel %vm3881_vm10, %v145_v62, %v334_v43  ;;  %v372_v7 = vsel %vm3881_vm10, %v144_v6, %v333_v46 }
 0x103   :  { %v2298_v0 = vpop.permute.xlu0 %2297 }
 0x104   :  { %v257_v55 = vsel %vm3882_vm15, %v2309_v49, %v2310_v45  ;;  %v265_v61 = vsel %vm3882_vm15, %v2310_v45, %v2309_v49  ;;  %v2300_v56 = vunpack.i.h.bf16 %v2298_v0  ;;  %v2299_v60 = vunpack.i.l.bf16 %v2298_v0  ;;  %v386_v49 = vld [vmem:[%s3870_s3] sm:$0xff] }
 0x105   :  { %v2313_v57 = vpop.permute.xlu1 %2312  ;;  %v280_v58 = vsel %vm2899_vm1, %v265_v61, 0.0  ;;  %v279_v59 = vsel %vm2895_vm0, %v257_v55, 0.0 }
 0x106   :  { %v2315_v63 = vunpack.i.h.bf16 %v2313_v57  ;;  %v2314_v4 = vunpack.i.l.bf16 %v2313_v57  ;;  %v383_v47 = vsel %vm3881_vm10, %v280_v58, %v362_v53  ;;  %v382_v48 = vsel %vm3881_vm10, %v279_v59, %v361_v52 }
 0x107   :  { %v2303_v5 = vpop.permute.xlu0 %2302  ;;  %v2119_v8 = vpack.c.bf16 %v383_v47, %v379_v34  ;;  %v2121_v9 = vpack.c.bf16 %v382_v48, %v378_v37  ;;  %v237_v10 = vsel %vm3883_vm12, %v2300_v56, %v2299_v60  ;;  %v243_v11 = vsel %vm3883_vm12, %v2299_v60, %v2300_v56 }
 0x108   :  { %v2305_v16 = vunpack.i.h.bf16 %v2303_v5  ;;  %v2304_v17 = vunpack.i.l.bf16 %v2303_v5  ;;  %v258_v20 = vsel %vm3882_vm15, %v2314_v4, %v2315_v63  ;;  %v266_v41 = vsel %vm3882_vm15, %v2315_v63, %v2314_v4 }
 0x109   :  { %v308_v21 = vpop.permute.xlu1 %307  ;;  %2120 = vmatprep.subr.bf16.mxu0 %v2119_v8  ;;  %v247_v40 = vsel %vm2883_vm13, %v237_v10, 0.0  ;;  %v246_v22 = vsel %vm2887_vm14, %v243_v11, 0.0  ;;  %v281_v45 = vsel %vm2895_vm0, %v258_v20, 0.0 }
 0x10a   :  { %v292_v23 = vsel %vm3882_vm15, %v2304_v17, %v2305_v16  ;;  %v300_v24 = vsel %vm3882_vm15, %v2305_v16, %v2304_v17  ;;  %2122 = vmatpush1.bf16.msra.mxu0 %v2121_v9  ;;  %v377_v25 = vsel %vm3881_vm10, %v247_v40, %v342_v13  ;;  %v376_v26 = vsel %vm3881_vm10, %v246_v22, %v341_v1 }
 0x10b   :  { %v303_v27 = vsel %vm2895_vm0, %v292_v23, 0.0  ;;  %v304_v28 = vsel %vm2899_vm1, %v300_v24, 0.0  ;;  %v306_v33 = vpop.permute.xlu0 %305  ;;  %v2123_v34 = vpack.c.bf16 %v377_v25, %v373_v19  ;;  %v2125_v35 = vpack.c.bf16 %v376_v26, %v372_v7 }
 0x10c   :  { %v363_v36 = vrot.slane %v303_v27, 4  ;;  %v364_v37 = vrot.slane %v304_v28, 4  ;;  %v313_v38 = vsel %vm3882_vm15, %v306_v33, %v308_v21  ;;  %v321_v15 = vsel %vm3882_vm15, %v308_v21, %v306_v33 }
 0x10d   :  { %v323_v43 = vsel %vm2895_vm0, %v313_v38, 0.0  ;;  %v324_v13 = vsel %vm2899_vm1, %v321_v15, 0.0  ;;  %2124 = vmatprep.subr.bf16.mxu1 %v2123_v34  ;;  %v282_v1 = vsel %vm2899_vm1, %v266_v41, 0.0  ;;  %v312_v53 = vpop.permute.xlu1 %311 }
 0x10e   :  { %2126 = vmatpush1.bf16.msra.mxu1 %v2125_v35  ;;  %2046 = vmatprep.subr.msk.mxu0 %vm3881_vm10, %v324_v13  ;;  %v385_v50 = vsel %vm3881_vm10, %v282_v1, %v364_v37  ;;  %v384_v52 = vsel %vm3881_vm10, %v281_v45, %v363_v36  ;;  %v650_v13 = vld [vmem:[%s3873_s6 + $0x8] sm:$0xff] }
 0x10f   :  { %v310_v0 = vpop.permute.xlu0 %309  ;;  %2047 = vmatpush1.msk.msra.mxu0 %vm3881_vm10, %v323_v43  ;;  %v2127_v46 = vpack.c.bf16 %v385_v50, %v2947_v54  ;;  %v2129_v55 = vpack.c.bf16 %v384_v52, %v380_v51  ;;  %v649_v43 = vld [vmem:[%s3873_s6] sm:$0xff] }
 0x110   :  { %v322_v61 = vsel %vm3882_vm15, %v312_v53, %v310_v0  ;;  %2048 = vmatmul.mubr.msk.f32.vlgmr.msra.gmra.mrb[0].mxu0 %vm400_vm11, %v386_v49  ;;  %v314_v12 = vsel %vm3882_vm15, %v310_v0, %v312_v53 }
 0x111   :  { %v326_v56 = vsel %vm2899_vm1, %v322_v61, 0.0  ;;  %2128 = vmatprep.subr.bf16.mxu1 %v2127_v46  ;;  %483 = vmatprep.mubr.f32.mxu0 %v2625_v18  ;;  %v325_v39 = vsel %vm2895_vm0, %v314_v12, 0.0 }
 0x112   :  { %2130 = vmatpush1.bf16.msra.mxu1 %v2129_v55 }
 0x113   :  { %2050 = vmatprep.subr.msk.mxu1 %vm3881_vm10, %v326_v56 }
 0x114   :  { %2049 = vmatmul.mubr.msk.f32.gmra.mrb[2].mxu0 %vm400_vm11, %v387_v2 }
 0x116   :  { %2051 = vmatpush1.msk.msra.mxu1 %vm3881_vm10, %v325_v39 }
 0x117   :  { %2052 = vmatmul.mubr.msk.f32.vlgmr.msra.gmra.mrb[0].mxu1 %vm400_vm11, %v386_v49 }
 0x118   :  { %566 = vmatprep.mubr.f32.mxu1 %v2625_v18 }
 0x11b   :  { %2053 = vmatmul.mubr.msk.f32.gmra.mrb[2].mxu1 %vm400_vm11, %v387_v2 }
 0x11e   :  { %v398_v63 = vpop.permute.xlu1 %397 }
 0x120   :  { %v393_v54 = vpop.permute.xlu0 %392 }
 0x122   :  { %v3054_v1 = vpop.permute.xlu1 %638 }
 0x124   :  { %v634_v45 = vpop.permute.xlu0 %633 }
 0x1e3   :  { %v479_v60 = vpop.f32.mrb[0].mxu0 }
 0x1e4   :  { %v3018_v57 = vadd.f32 %v479_v60, %v393_v54  ;;  %v481_v58 = vpop.f32.mrb[1].mxu0 }
 0x1e5   :  { %v3020_v59 = vadd.f32 %v481_v58, %v393_v54 }
 0x1e6   :  { %v585_v62 = vmul.f32 %v3018_v57, %v3018_v57 }
 0x1e7   :  { %v586_v6 = vmul.f32 %v3020_v59, %v3020_v59  ;;  %v485_v4 = vpop.f32.mrb[2].mxu0  ;;  %v573_v5 = vadd.f32 %v3020_v59, %v3018_v57 }
 0x1e8   :  { %v3026_v47 = vadd.f32 %v485_v4, %v398_v63  ;;  %v487_v48 = vpop.f32.mrb[3].mxu0 }
 0x1e9   :  { %v3030_v8 = vadd.f32 %v487_v48, %v398_v63  ;;  %v593_v19 = vadd.f32 %v586_v6, %v585_v62 }
 0x1ea   :  { %v562_v9 = vpop.f32.mrb[0].mxu1  ;;  %v587_v11 = vmul.f32 %v3026_v47, %v3026_v47 }
 0x1eb   :  { %v563_v10 = vadd.f32 %v562_v9, %v393_v54  ;;  %v564_v16 = vpop.f32.mrb[1].mxu1  ;;  %v588_v17 = vmul.f32 %v3030_v8, %v3030_v8  ;;  %v578_v41 = vadd.f32 %v3030_v8, %v3026_v47 }
 0x1ec   :  { %v565_v7 = vadd.f32 %v564_v16, %v393_v54 }
 0x1ed   :  { %v589_v20 = vmul.f32 %v563_v10, %v563_v10  ;;  %v574_v21 = vadd.f32 %v573_v5, %v563_v10  ;;  %v598_v27 = vadd.f32 %v588_v17, %v587_v11 }
 0x1ee   :  { %v568_v40 = vpop.f32.mrb[2].mxu1  ;;  %v590_v22 = vmul.f32 %v565_v7, %v565_v7 }
 0x1ef   :  { %v3038_v23 = vadd.f32 %v568_v40, %v398_v63  ;;  %v570_v24 = vpop.f32.mrb[3].mxu1  ;;  %v575_v25 = vadd.f32 %v574_v21, %v565_v7  ;;  %v594_v26 = vadd.f32 %v593_v19, %v589_v20 }
 0x1f0   :  { %v3040_v28 = vadd.f32 %v570_v24, %v398_v63 }
 0x1f1   :  { %v591_v33 = vmul.f32 %v3038_v23, %v3038_v23  ;;  %576 = vadd.xlane.f32.xlu1 %v575_v25  ;;  %v595_v34 = vadd.f32 %v594_v26, %v590_v22  ;;  %v579_v35 = vadd.f32 %v578_v41, %v3038_v23 }
 0x1f2   :  { %v592_v36 = vmul.f32 %v3040_v28, %v3040_v28 }
 0x1f3   :  { %596 = vadd.xlane.f32.xlu0 %v595_v34  ;;  %v599_v37 = vadd.f32 %v598_v27, %v591_v33  ;;  %v580_v38 = vadd.f32 %v579_v35, %v3040_v28 }
 0x1f5   :  { %v600_v15 = vadd.f32 %v599_v37, %v592_v36 }
 0x1f7   :  { %581 = vadd.xlane.f32.xlu0 %v580_v38  ;;  %601 = vadd.xlane.f32.xlu1 %v600_v15 }
 0x208   :  { %653 = vperm.xlu1 %2317, %v649_v43  }
 0x20d   :  { %658 = vperm.xlu0 %2316, %v650_v13  }
 0x27e   :  { %v577_v49 = vpop.xlane.xlu1 %576 }
 0x27f   :  { %v583_v50 = vmul.f32 0.001953125, %v577_v49 }
 0x280   :  { %v597_v51 = vpop.xlane.xlu0 %596 }
 0x281   :  { %v603_v52 = vmul.f32 0.001953125, %v597_v51  ;;  %v605_v53 = vmul.f32 %v583_v50, %v583_v50  ;;  %v609_v60 = vsub.f32 %v3018_v57, %v583_v50  ;;  %v610_v58 = vsub.f32 %v3020_v59, %v583_v50 }
 0x282   :  { %v613_v62 = vsub.f32 %v563_v10, %v583_v50  ;;  %v614_v6 = vsub.f32 %v565_v7, %v583_v50 }
 0x283   :  { %v607_v0 = vsub.f32 %v603_v52, %v605_v53 }
 0x284   :  { %v582_v46 = vpop.xlane.xlu0 %581  ;;  %v602_v55 = vpop.xlane.xlu1 %601 }
 0x285   :  { %v617_v61 = vadd.f32 1e-05, %v607_v0  ;;  %v584_v56 = vmul.f32 0.001953125, %v582_v46  ;;  %v604_v12 = vmul.f32 0.001953125, %v602_v55 }
 0x287   :  { %2522 = vrsqrt.f32 %v617_v61  ;;  %v606_v2 = vmul.f32 %v584_v56, %v584_v56  ;;  %v611_v34 = vsub.f32 %v3026_v47, %v584_v56  ;;  %v612_v15 = vsub.f32 %v3030_v8, %v584_v56 }
 0x288   :  { %v654_v20 = vpop.permute.xlu1 %653  ;;  %v615_v43 = vsub.f32 %v3038_v23, %v584_v56  ;;  %v616_v47 = vsub.f32 %v3040_v28, %v584_v56 }
 0x289   :  { %v608_v39 = vsub.f32 %v604_v12, %v606_v2 }
 0x28b   :  { %v618_v54 = vadd.f32 1e-05, %v608_v39 }
 0x28c   :  { %v659_v39 = vpop.permute.xlu0 %658 }
 0x28d   :  { %2524 = vrsqrt.f32 %v618_v54 }
 0x291   :  { %v2523_v63 = vpop.eup %2522 }
 0x292   :  { %v621_v4 = vmul.f32 %v2523_v63, %v609_v60  ;;  %v622_v48 = vmul.f32 %v2523_v63, %v610_v58  ;;  %v625_v5 = vmul.f32 %v2523_v63, %v613_v62  ;;  %v626_v9 = vmul.f32 %v2523_v63, %v614_v6 }
 0x294   :  { %v641_v11 = vmul.f32 %v634_v45, %v621_v4  ;;  %v642_v16 = vmul.f32 %v634_v45, %v622_v48  ;;  %v645_v17 = vmul.f32 %v634_v45, %v625_v5  ;;  %v646_v19 = vmul.f32 %v634_v45, %v626_v9 }
 0x296   :  { %v661_v41 = vadd.f32 %v654_v20, %v641_v11  ;;  %v3058_v21 = vadd.f32 %v654_v20, %v642_v16  ;;  %v3060_v40 = vadd.f32 %v654_v20, %v645_v17  ;;  %v3062_v57 = vadd.f32 %v654_v20, %v646_v19 }
 0x297   :  { %v2525_v24 = vpop.eup %2524 }
 0x298   :  { %v3064_v59 = vmul.f32 0.70710677, %v661_v41  ;;  %v3067_v10 = vmul.f32 0.70710677, %v3058_v21  ;;  %v3070_v7 = vmul.f32 0.70710677, %v3060_v40  ;;  %v623_v13 = vmul.f32 %v2525_v24, %v611_v34 }
 0x299   :  { %v3073_v22 = vmul.f32 0.70710677, %v3062_v57  ;;  %v624_v0 = vmul.f32 %v2525_v24, %v612_v15  ;;  %v627_v46 = vmul.f32 %v2525_v24, %v615_v43  ;;  %v628_v8 = vmul.f32 %v2525_v24, %v616_v47 }
 0x29a   :  { %v677_v25 = vand.u32 2147483647, %v3064_v59  ;;  %v678_v26 = vand.u32 2147483647, %v3067_v10  ;;  %v681_v27 = vand.u32 2147483647, %v3070_v7  ;;  %v643_v23 = vmul.f32 %v3054_v1, %v623_v13 }
 0x29b   :  { %v682_v33 = vand.u32 2147483647, %v3073_v22  ;;  %v644_v54 = vmul.f32 %v3054_v1, %v624_v0  ;;  %v647_v60 = vmul.f32 %v3054_v1, %v627_v46  ;;  %v648_v62 = vmul.f32 %v3054_v1, %v628_v8 }
 0x29c   :  { %v685_v35 = vmul.f32 0.3275911, %v677_v25  ;;  %v686_v36 = vmul.f32 0.3275911, %v678_v26  ;;  %v689_v37 = vmul.f32 0.3275911, %v681_v27  ;;  %v3087_v6 = vadd.f32 %v659_v39, %v643_v23 }
 0x29d   :  { %v690_v38 = vmul.f32 0.3275911, %v682_v33  ;;  %v789_v51 = vsub.f32 0.0, %v677_v25  ;;  %v790_v53 = vsub.f32 0.0, %v678_v26  ;;  %v793_v55 = vsub.f32 0.0, %v681_v27 }
 0x29e   :  { %v693_v45 = vadd.f32 1.0, %v685_v35  ;;  %v694_v49 = vadd.f32 1.0, %v686_v36  ;;  %v697_v50 = vadd.f32 1.0, %v689_v37  ;;  %v794_v61 = vsub.f32 0.0, %v682_v33 }
 0x29f   :  { %v698_v52 = vadd.f32 1.0, %v690_v38  ;;  %v797_v2 = vmul.f32 %v789_v51, %v677_v25  ;;  %v798_v12 = vmul.f32 %v790_v53, %v678_v26  ;;  %v801_v58 = vmul.f32 %v793_v55, %v681_v27 }
 0x2a0   :  { %2526 = vrcp.f32 %v693_v45  ;;  %v802_v28 = vmul.f32 %v794_v61, %v682_v33  ;;  %v3089_v56 = vadd.f32 %v659_v39, %v644_v54  ;;  %v3091_v63 = vadd.f32 %v659_v39, %v647_v60 }
 0x2a1   :  { %2528 = vrcp.f32 %v694_v49  ;;  %v805_v4 = vmul.f32 1.442695, %v797_v2  ;;  %v3093_v48 = vmul.f32 0.5, %v661_v41  ;;  %v3095_v5 = vadd.f32 %v659_v39, %v648_v62 }
 0x2a2   :  { %2530 = vrcp.f32 %v697_v50  ;;  %v3098_v9 = vmul.f32 0.70710677, %v3087_v6  ;;  %v807_v11 = vmul.f32 1.442695, %v798_v12  ;;  %v3101_v16 = vmul.f32 0.70710677, %v3089_v56 }
 0x2a3   :  { %2532 = vrcp.f32 %v698_v52  ;;  %v3104_v1 = vmul.f32 0.70710677, %v3091_v63  ;;  %v813_v17 = vmul.f32 1.442695, %v801_v58  ;;  %v3107_v19 = vmul.f32 0.70710677, %v3095_v5 }
 0x2a4   :  { %v679_v20 = vand.u32 2147483647, %v3098_v9  ;;  %v815_v41 = vmul.f32 1.442695, %v802_v28  ;;  %v680_v24 = vand.u32 2147483647, %v3101_v16  ;;  %2534 = vpow2.f32 %v805_v4 }
 0x2a5   :  { %v683_v25 = vand.u32 2147483647, %v3104_v1  ;;  %v684_v27 = vand.u32 2147483647, %v3107_v19  ;;  %2536 = vpow2.f32 %v807_v11  ;;  %vm837_vm11 = vcmp.ge.f32.partialorder %v3064_v59, 0.0 }
 0x2a6   :  { %v687_v33 = vmul.f32 0.3275911, %v679_v20  ;;  %v791_v34 = vsub.f32 0.0, %v679_v20  ;;  %v688_v37 = vmul.f32 0.3275911, %v680_v24  ;;  %v792_v49 = vsub.f32 0.0, %v680_v24 }
 0x2a7   :  { %v691_v38 = vmul.f32 0.3275911, %v683_v25  ;;  %v692_v13 = vmul.f32 0.3275911, %v684_v27  ;;  %v795_v8 = vsub.f32 0.0, %v683_v25  ;;  %v796_v39 = vsub.f32 0.0, %v684_v27 }
 0x2a8   :  { %v695_v45 = vadd.f32 1.0, %v687_v33  ;;  %v696_v53 = vadd.f32 1.0, %v688_v37  ;;  %v799_v58 = vmul.f32 %v791_v34, %v679_v20  ;;  %v800_v4 = vmul.f32 %v792_v49, %v680_v24 }
 0x2a9   :  { %v699_v0 = vadd.f32 1.0, %v691_v38  ;;  %v700_v47 = vadd.f32 1.0, %v692_v13  ;;  %v803_v11 = vmul.f32 %v795_v8, %v683_v25  ;;  %v804_v37 = vmul.f32 %v796_v39, %v684_v27 }
 0x2aa   :  { %v3112_v26 = vpop.eup %2526  ;;  %2538 = vrcp.f32 %v695_v45  ;;  %v809_v38 = vmul.f32 1.442695, %v799_v58  ;;  %v3134_v49 = vmul.f32 0.5, %v3058_v21  ;;  %vm838_vm10 = vcmp.ge.f32.partialorder %v3067_v10, 0.0 }
 0x2ab   :  { %v3115_v35 = vpop.eup %2528  ;;  %v717_v36 = vmul.f32 1.0614054, %v3112_v26  ;;  %2540 = vrcp.f32 %v696_v53  ;;  %v817_v34 = vmul.f32 1.442695, %v803_v11  ;;  %v819_v27 = vmul.f32 1.442695, %v804_v37 }
 0x2ac   :  { %v3118_v15 = vpop.eup %2530  ;;  %v718_v43 = vmul.f32 1.0614054, %v3115_v35  ;;  %2542 = vrcp.f32 %v699_v0  ;;  %vm841_vm15 = vcmp.ge.f32.partialorder %v3070_v7, 0.0  ;;  %vm842_vm12 = vcmp.ge.f32.partialorder %v3073_v22, 0.0 }
 0x2ad   :  { %v3121_v50 = vpop.eup %2532  ;;  %v721_v51 = vmul.f32 1.0614054, %v3118_v15  ;;  %v725_v52 = vadd.f32 -1.4531521, %v717_v36  ;;  %2544 = vrcp.f32 %v700_v47 }
 0x2ae   :  { %v722_v46 = vmul.f32 1.0614054, %v3121_v50  ;;  %v726_v55 = vadd.f32 -1.4531521, %v718_v43  ;;  %v2535_v43 = vpop.eup %2534  ;;  %2546 = vpow2.f32 %v813_v17 }
 0x2af   :  { %v729_v61 = vadd.f32 -1.4531521, %v721_v51  ;;  %v733_v2 = vmul.f32 %v3112_v26, %v725_v52  ;;  %v811_v51 = vmul.f32 1.442695, %v800_v4  ;;  %v2537_v52 = vpop.eup %2536  ;;  %2548 = vpow2.f32 %v815_v41 }
 0x2b0   :  { %v730_v23 = vadd.f32 -1.4531521, %v722_v46  ;;  %v734_v12 = vmul.f32 %v3115_v35, %v726_v55  ;;  %v3138_v55 = vmul.f32 0.5, %v3060_v40  ;;  %2550 = vpow2.f32 %v809_v38 }
 0x2b1   :  { %v737_v54 = vmul.f32 %v3118_v15, %v729_v61  ;;  %v741_v60 = vadd.f32 1.4214138, %v733_v2  ;;  %v3144_v61 = vmul.f32 0.5, %v3062_v57  ;;  %2552 = vpow2.f32 %v811_v51 }
 0x2b2   :  { %v738_v62 = vmul.f32 %v3121_v50, %v730_v23  ;;  %v742_v28 = vadd.f32 1.4214138, %v734_v12  ;;  %2554 = vpow2.f32 %v817_v34 }
 0x2b3   :  { %v745_v33 = vadd.f32 1.4214138, %v737_v54  ;;  %v749_v36 = vmul.f32 %v3112_v26, %v741_v60  ;;  %2556 = vpow2.f32 %v819_v27 }
 0x2b4   :  { %v746_v13 = vadd.f32 1.4214138, %v738_v62  ;;  %v750_v45 = vmul.f32 %v3115_v35, %v742_v28  ;;  %v3140_v17 = vpop.eup %2538 }
 0x2b5   :  { %v753_v53 = vmul.f32 %v3118_v15, %v745_v33  ;;  %v757_v20 = vadd.f32 -0.28449672, %v749_v36  ;;  %v3146_v2 = vpop.eup %2540  ;;  %v719_v23 = vmul.f32 1.0614054, %v3140_v17 }
 0x2b6   :  { %v754_v24 = vmul.f32 %v3121_v50, %v746_v13  ;;  %v758_v25 = vadd.f32 -0.28449672, %v750_v45  ;;  %v3150_v40 = vpop.eup %2542  ;;  %v720_v54 = vmul.f32 1.0614054, %v3146_v2 }
 0x2b7   :  { %v761_v0 = vadd.f32 -0.28449672, %v753_v53  ;;  %v765_v46 = vmul.f32 %v3112_v26, %v757_v20  ;;  %v3155_v57 = vpop.eup %2544  ;;  %v723_v62 = vmul.f32 1.0614054, %v3150_v40  ;;  %v727_v28 = vadd.f32 -1.4531521, %v719_v23 }
 0x2b8   :  { %v762_v47 = vadd.f32 -0.28449672, %v754_v24  ;;  %v766_v41 = vmul.f32 %v3115_v35, %v758_v25  ;;  %v724_v33 = vmul.f32 1.0614054, %v3155_v57  ;;  %v728_v36 = vadd.f32 -1.4531521, %v720_v54  ;;  %v2547_v45 = vpop.eup %2546 }
 0x2b9   :  { %v769_v21 = vmul.f32 %v3118_v15, %v761_v0  ;;  %v773_v8 = vadd.f32 0.2548296, %v765_v46  ;;  %v731_v13 = vadd.f32 -1.4531521, %v723_v62  ;;  %v2549_v34 = vpop.eup %2548 }
 0x2ba   :  { %v770_v12 = vmul.f32 %v3121_v50, %v762_v47  ;;  %v774_v39 = vadd.f32 0.2548296, %v766_v41  ;;  %v732_v20 = vadd.f32 -1.4531521, %v724_v33  ;;  %v2551_v41 = vpop.eup %2550 }
 0x2bb   :  { %v777_v60 = vadd.f32 0.2548296, %v769_v21  ;;  %v781_v58 = vmul.f32 %v3112_v26, %v773_v8  ;;  %v735_v26 = vmul.f32 %v3140_v17, %v727_v28  ;;  %v739_v27 = vmul.f32 %v3150_v40, %v731_v13 }
 0x2bc   :  { %v778_v4 = vadd.f32 0.2548296, %v770_v12  ;;  %v782_v11 = vmul.f32 %v3115_v35, %v774_v39  ;;  %v736_v35 = vmul.f32 %v3146_v2, %v728_v36  ;;  %v740_v46 = vmul.f32 %v3155_v57, %v732_v20 }
 0x2bd   :  { %v785_v37 = vmul.f32 %v3118_v15, %v777_v60  ;;  %v821_v38 = vmul.f32 %v2535_v43, %v781_v58  ;;  %v743_v0 = vadd.f32 1.4214138, %v735_v26  ;;  %v747_v23 = vadd.f32 1.4214138, %v739_v27 }
 0x2be   :  { %v786_v51 = vmul.f32 %v3121_v50, %v778_v4  ;;  %v822_v53 = vmul.f32 %v2537_v52, %v782_v11  ;;  %v744_v47 = vadd.f32 1.4214138, %v736_v35  ;;  %v2553_v52 = vpop.eup %2552  ;;  %v748_v54 = vadd.f32 1.4214138, %v740_v46 }
 0x2bf   :  { %v825_v24 = vmul.f32 %v2547_v45, %v785_v37  ;;  %v829_v25 = vsub.f32 1.0, %v821_v38  ;;  %v751_v50 = vmul.f32 %v3140_v17, %v743_v0  ;;  %v2555_v58 = vpop.eup %2554  ;;  %v755_v4 = vmul.f32 %v3150_v40, %v747_v23 }
 0x2c0   :  { %v826_v15 = vmul.f32 %v2549_v34, %v786_v51  ;;  %v830_v43 = vsub.f32 1.0, %v822_v53  ;;  %v752_v60 = vmul.f32 %v3146_v2, %v744_v47  ;;  %v2557_v33 = vpop.eup %2556  ;;  %v756_v13 = vmul.f32 %v3155_v57, %v748_v54 }
 0x2c1   :  { %v833_v21 = vsub.f32 1.0, %v825_v24  ;;  %v845_v8 = vsub.f32 0.0, %v829_v25  ;;  %v759_v11 = vadd.f32 -0.28449672, %v751_v50  ;;  %v763_v53 = vadd.f32 -0.28449672, %v755_v4 }
 0x2c2   :  { %v834_v12 = vsub.f32 1.0, %v826_v15  ;;  %v846_v39 = vsub.f32 0.0, %v830_v43  ;;  %v760_v51 = vadd.f32 -0.28449672, %v752_v60  ;;  %v764_v34 = vadd.f32 -0.28449672, %v756_v13 }
 0x2c3   :  { %v849_v62 = vsub.f32 0.0, %v833_v21  ;;  %v853_v28 = vsel %vm837_vm11, %v829_v25, %v845_v8  ;;  %v767_v25 = vmul.f32 %v3140_v17, %v759_v11  ;;  %v771_v15 = vmul.f32 %v3150_v40, %v763_v53 }
 0x2c4   :  { %v850_v36 = vsub.f32 0.0, %v834_v12  ;;  %v854_v37 = vsel %vm838_vm10, %v830_v43, %v846_v39  ;;  %v869_v38 = vadd.f32 1.0, %v853_v28  ;;  %v768_v27 = vmul.f32 %v3146_v2, %v760_v51 }
 0x2c5   :  { %v857_v26 = vsel %vm841_vm15, %v833_v21, %v849_v62  ;;  %v870_v45 = vadd.f32 1.0, %v854_v37  ;;  %v772_v22 = vmul.f32 %v3155_v57, %v764_v34  ;;  %v863_v37 = vmul.f32 0.5, %v3087_v6 }
 0x2c6   :  { %v858_v59 = vsel %vm842_vm12, %v834_v12, %v850_v36  ;;  %v873_v20 = vadd.f32 1.0, %v857_v26  ;;  %v877_v35 = vmul.f32 %v869_v38, %v3093_v48  ;;  %v775_v48 = vadd.f32 0.2548296, %v767_v25 }
 0x2c7   :  { %v874_v24 = vadd.f32 1.0, %v858_v59  ;;  %v878_v10 = vmul.f32 %v870_v45, %v3134_v49  ;;  %v776_v47 = vadd.f32 0.2548296, %v768_v27  ;;  %v779_v49 = vadd.f32 0.2548296, %v771_v15 }
 0x2c8   :  { %v881_v7 = vmul.f32 %v873_v20, %v3138_v55  ;;  %v3187_v0 = vmin.f32 %v877_v35, 1.0  ;;  %v780_v8 = vadd.f32 0.2548296, %v772_v22  ;;  %v783_v55 = vmul.f32 %v3140_v17, %v775_v48 }
 0x2c9   :  { %v882_v43 = vmul.f32 %v874_v24, %v3144_v61  ;;  %v3192_v46 = vmin.f32 %v878_v10, 1.0  ;;  %v784_v50 = vmul.f32 %v3146_v2, %v776_v47  ;;  %v787_v61 = vmul.f32 %v3150_v40, %v779_v49 }
 0x2ca   :  { %v3194_v21 = vmin.f32 %v881_v7, 1.0  ;;  %v788_v39 = vmul.f32 %v3155_v57, %v780_v8  ;;  %v823_v54 = vmul.f32 %v2551_v41, %v783_v55  ;;  %vm839_vm12 = vcmp.ge.f32.partialorder %v3098_v9, 0.0 }
 0x2cb   :  { %v3196_v23 = vmin.f32 %v882_v43, 1.0  ;;  %v3202_v12 = vpack.i.bf16 %v3192_v46, %v3187_v0  ;;  %v824_v60 = vmul.f32 %v2553_v52, %v784_v50  ;;  %v827_v62 = vmul.f32 %v2555_v58, %v787_v61 }
 0x2cc   :  { %v828_v28 = vmul.f32 %v2557_v33, %v788_v39  ;;  %v831_v2 = vsub.f32 1.0, %v823_v54  ;;  %v864_v41 = vmul.f32 0.5, %v3089_v56  ;;  %vm840_vm15 = vcmp.ge.f32.partialorder %v3101_v16, 0.0 }
 0x2cd   :  { %2319 = vrot.lane.b32.xlu1 %v3202_v12, %s2621_s14  ;;  %v3210_v17 = vpack.i.bf16 %v3196_v23, %v3194_v21  ;;  %v832_v4 = vsub.f32 1.0, %v824_v60  ;;  %v835_v11 = vsub.f32 1.0, %v827_v62  ;;  %vm843_vm10 = vcmp.ge.f32.partialorder %v3104_v1, 0.0 }
 0x2ce   :  { %v836_v36 = vsub.f32 1.0, %v828_v28  ;;  %v847_v40 = vsub.f32 0.0, %v831_v2  ;;  %vm844_vm11 = vcmp.ge.f32.partialorder %v3107_v19, 0.0  ;;  %v867_v45 = vmul.f32 0.5, %v3091_v63 }
 0x2cf   :  { %v848_v57 = vsub.f32 0.0, %v832_v4  ;;  %v851_v52 = vsub.f32 0.0, %v835_v11  ;;  %v868_v56 = vmul.f32 0.5, %v3095_v5 }
 0x2d0   :  { %v852_v58 = vsub.f32 0.0, %v836_v36  ;;  %v855_v33 = vsel %vm839_vm12, %v831_v2, %v847_v40  ;;  %vm3480_vm12 = vmpackc.low %vm2883_vm13, %vm2883_vm13 }
 0x2d1   :  { %2324 = vrot.lane.b32.xlu1 %v3210_v17, %s2621_s14  ;;  %v856_v38 = vsel %vm840_vm15, %v832_v4, %v848_v57  ;;  %v859_v6 = vsel %vm843_vm10, %v835_v11, %v851_v52  ;;  %v871_v9 = vadd.f32 1.0, %v855_v33  ;;  %vm3487_vm15 = vmpackc.low %vm2887_vm14, %vm2887_vm14 }
 0x2d2   :  { %v860_v13 = vsel %vm844_vm11, %v836_v36, %v852_v58  ;;  %v872_v26 = vadd.f32 1.0, %v856_v38  ;;  %v875_v51 = vadd.f32 1.0, %v859_v6 }
 0x2d3   :  { %v876_v53 = vadd.f32 1.0, %v860_v13  ;;  %v879_v16 = vmul.f32 %v871_v9, %v863_v37 }
 0x2d4   :  { %v880_v1 = vmul.f32 %v872_v26, %v864_v41  ;;  %v883_v59 = vmul.f32 %v875_v51, %v867_v45 }
 0x2d5   :  { %2329 = vrot.lane.b32.xlu1 %v3202_v12, %s2618_s27  ;;  %v884_v20 = vmul.f32 %v876_v53, %v868_v56  ;;  %v3224_v19 = vmin.f32 %v879_v16, 1.0 }
 0x2d6   :  { %v3226_v35 = vmin.f32 %v880_v1, 1.0  ;;  %v3230_v34 = vmin.f32 %v883_v59, 1.0 }
 0x2d7   :  { %v3232_v63 = vmin.f32 %v884_v20, 1.0  ;;  %v2343_v5 = vpack.i.bf16 %v3224_v19, %v3187_v0  ;;  %v2155_v7 = vpack.c.bf16 %v3224_v19, %v3187_v0 }
 0x2d8   :  { %v2338_v24 = vpack.i.bf16 %v3226_v35, %v3192_v46  ;;  %v3241_v10 = vpack.i.bf16 %v3226_v35, %v3224_v19  ;;  %v2153_v27 = vpack.c.bf16 %v3226_v35, %v3192_v46  ;;  %v2203_v43 = vpack.c.bf16 %v3230_v34, %v3194_v21 }
 0x2d9   :  { %2334 = vrot.lane.b32.xlu1 %v3210_v17, %s2618_s27  ;;  %2344 = vrot.lane.b32.xlu0 %v2343_v5, %s2620_s30  ;;  %v3246_v25 = vpack.i.bf16 %v3232_v63, %v3230_v34  ;;  %v2353_v15 = vpack.i.bf16 %v3232_v63, %v3196_v23  ;;  %v2201_v22 = vpack.c.bf16 %v3232_v63, %v3196_v23 }
 0x2da   :  { %v2358_v48 = vpack.i.bf16 %v3230_v34, %v3194_v21 }
 0x2dd   :  { %2339 = vrot.lane.b32.xlu1 %v2338_v24, %s2620_s30  ;;  %2349 = vrot.lane.b32.xlu0 %v3241_v10, %s2621_s14 }
 0x2e1   :  { %2354 = vrot.lane.b32.xlu1 %v2353_v15, %s2620_s30  ;;  %2359 = vrot.lane.b32.xlu0 %v2358_v48, %s2620_s30 }
 0x2e5   :  { %2374 = vrot.lane.b32.xlu1 %v2338_v24, %s2622_s15  ;;  %2364 = vrot.lane.b32.xlu0 %v3246_v25, %s2621_s14 }
 0x2e9   :  { %2389 = vrot.lane.b32.xlu1 %v2353_v15, %s2622_s15  ;;  %2369 = vrot.lane.b32.xlu0 %v3241_v10, %s2618_s27 }
 0x2ed   :  { %2399 = vrot.lane.b32.xlu1 %v2338_v24, %s2623_s16  ;;  %2379 = vrot.lane.b32.xlu0 %v2343_v5, %s2622_s15 }
 0x2f1   :  { %2409 = vrot.lane.b32.xlu1 %v2353_v15, %s2623_s16  ;;  %2384 = vrot.lane.b32.xlu0 %v3246_v25, %s2618_s27 }
 0x2f5   :  { %2394 = vrot.lane.b32.xlu0 %v2358_v48, %s2622_s15 }
 0x2f9   :  { %2404 = vrot.lane.b32.xlu0 %v2343_v5, %s2623_s16 }
 0x2fd   :  { %2414 = vrot.lane.b32.xlu0 %v2358_v48, %s2623_s16 }
 0x33f   :  { %v2320_v47 = vpop.permute.xlu1 %2319 }
 0x340   :  { %v2322_v50 = vunpack.i.h.bf16 %v2320_v47  ;;  %v2321_v61 = vunpack.i.l.bf16 %v2320_v47 }
 0x342   :  { %v953_v4 = vsel %vm80_vm4, %v2321_v61, %v2322_v50  ;;  %v969_v11 = vsel %vm80_vm4, %v2322_v50, %v2321_v61 }
 0x343   :  { %v2325_v49 = vpop.permute.xlu1 %2324 }
 0x344   :  { %v2327_v45 = vunpack.i.h.bf16 %v2325_v49  ;;  %v2326_v56 = vunpack.i.l.bf16 %v2325_v49 }
 0x346   :  { %v955_v49 = vsel %vm80_vm4, %v2326_v56, %v2327_v45  ;;  %v971_v50 = vsel %vm80_vm4, %v2327_v45, %v2326_v56 }
 0x347   :  { %v3278_v8 = vpop.permute.xlu1 %2329 }
 0x34b   :  { %v3280_v55 = vpop.permute.xlu1 %2334  ;;  %v2345_v39 = vpop.permute.xlu0 %2344 }
 0x34c   :  { %v2346_v60 = vunpack.i.l.bf16 %v2345_v39  ;;  %v2347_v2 = vunpack.i.h.bf16 %v2345_v39 }
 0x34f   :  { %v2340_v54 = vpop.permute.xlu1 %2339  ;;  %v2350_v36 = vpop.permute.xlu0 %2349 }
 0x350   :  { %v2342_v62 = vunpack.i.h.bf16 %v2340_v54  ;;  %v2341_v28 = vunpack.i.l.bf16 %v2340_v54  ;;  %v2352_v57 = vunpack.i.h.bf16 %v2350_v36  ;;  %v2351_v41 = vunpack.i.l.bf16 %v2350_v36 }
 0x352   :  { %v921_v37 = vsel %vm63_vm3, %v2346_v60, %v2341_v28  ;;  %v933_v40 = vsel %vm63_vm3, %v2341_v28, %v2346_v60  ;;  %v922_v52 = vsel %vm63_vm3, %v2347_v2, %v2342_v62  ;;  %v934_v58 = vsel %vm63_vm3, %v2342_v62, %v2347_v2 }
 0x353   :  { %v2355_v33 = vpop.permute.xlu1 %2354  ;;  %v3290_v38 = vsel %vm2770_vm6, %v969_v11, %v921_v37  ;;  %v3294_v6 = vsel %vm2766_vm5, %v953_v4, %v933_v40  ;;  %v954_v13 = vsel %vm80_vm4, %v2351_v41, %v2352_v57  ;;  %v970_v9 = vsel %vm80_vm4, %v2352_v57, %v2351_v41  ;;  %v2360_v51 = vpop.permute.xlu0 %2359 }
 0x354   :  { %v2356_v26 = vunpack.i.l.bf16 %v2355_v33  ;;  %v3300_v53 = vsel %vm2770_vm6, %v970_v9, %v922_v52  ;;  %v3304_v16 = vsel %vm2766_vm5, %v954_v13, %v934_v58  ;;  %v2361_v1 = vunpack.i.l.bf16 %v2360_v51 }
 0x355   :  { %v2357_v59 = vunpack.i.h.bf16 %v2355_v33  ;;  %v2418_v20 = vpack.i.bf16 %v3300_v53, %v3290_v38  ;;  %v2423_v5 = vpack.i.bf16 %v3304_v16, %v3294_v6  ;;  %v2149_v24 = vpack.c.bf16 %v3300_v53, %v3290_v38 }
 0x356   :  { %v2362_v15 = vunpack.i.h.bf16 %v2360_v51  ;;  %v923_v48 = vsel %vm63_vm3, %v2361_v1, %v2356_v26  ;;  %v935_v47 = vsel %vm63_vm3, %v2356_v26, %v2361_v1  ;;  %v2151_v39 = vpack.c.bf16 %v3304_v16, %v3294_v6 }
 0x357   :  { %2419 = vrot.lane.b32.xlu1 %v2418_v20, %s2623_s16  ;;  %v2365_v61 = vpop.permute.xlu0 %2364  ;;  %2424 = vrot.lane.b32.xlu0 %v2423_v5, %s2623_s16  ;;  %v3324_v2 = vsel %vm2770_vm6, %v971_v50, %v923_v48  ;;  %v3328_v4 = vsel %vm2766_vm5, %v955_v49, %v935_v47  ;;  %v2332_v41 = vunpack.i.h.bf16 %v3278_v8  ;;  %v2331_v33 = vunpack.i.l.bf16 %v3278_v8  ;;  %v2375_v26 = vpop.permute.xlu1 %2374 }
 0x358   :  { %v2367_v54 = vunpack.i.h.bf16 %v2365_v61  ;;  %v2366_v60 = vunpack.i.l.bf16 %v2365_v61  ;;  %v924_v62 = vsel %vm63_vm3, %v2362_v15, %v2357_v59  ;;  %v936_v28 = vsel %vm63_vm3, %v2357_v59, %v2362_v15 }
 0x359   :  { %v2377_v56 = vunpack.i.h.bf16 %v2375_v26  ;;  %v2376_v51 = vunpack.i.l.bf16 %v2375_v26  ;;  %v1093_v8 = vsel %vm176_vm2, %v2331_v33, %v2332_v41  ;;  %v1109_v20 = vsel %vm176_vm2, %v2332_v41, %v2331_v33 }
 0x35a   :  { %v956_v11 = vsel %vm80_vm4, %v2366_v60, %v2367_v54  ;;  %v972_v36 = vsel %vm80_vm4, %v2367_v54, %v2366_v60  ;;  %v2453_v31 = vpack.i.bf16 %v3290_v38, %v3294_v6 }
 0x35b   :  { %v2370_v37 = vpop.permute.xlu0 %2369  ;;  %v3334_v40 = vsel %vm2770_vm6, %v972_v36, %v924_v62  ;;  %v3338_v57 = vsel %vm2766_vm5, %v956_v11, %v936_v28  ;;  %v2337_v11 = vunpack.i.h.bf16 %v3280_v55  ;;  %v2336_v36 = vunpack.i.l.bf16 %v3280_v55 }
 0x35c   :  { %v2428_v52 = vpack.i.bf16 %v3334_v40, %v3324_v2  ;;  %v2433_v58 = vpack.i.bf16 %v3338_v57, %v3328_v4  ;;  %v2372_v13 = vunpack.i.h.bf16 %v2370_v37  ;;  %v2371_v9 = vunpack.i.l.bf16 %v2370_v37 }
 0x35d   :  { %v2197_v30 = vpack.c.bf16 %v3334_v40, %v3324_v2  ;;  %v2199_v29 = vpack.c.bf16 %v3338_v57, %v3328_v4 }
 0x35e   :  { %2429 = vrot.lane.b32.xlu1 %v2428_v52, %s2623_s16  ;;  %2434 = vrot.lane.b32.xlu0 %v2433_v58, %s2623_s16  ;;  %v1094_v5 = vsel %vm176_vm2, %v2371_v9, %v2372_v13  ;;  %v1110_v15 = vsel %vm176_vm2, %v2372_v13, %v2371_v9  ;;  %v2390_v52 = vpop.permute.xlu1 %2389 }
 0x35f   :  { %v2380_v45 = vpop.permute.xlu0 %2379  ;;  %v2392_v26 = vunpack.i.h.bf16 %v2390_v52 }
 0x360   :  { %v2382_v1 = vunpack.i.h.bf16 %v2380_v45  ;;  %v2381_v59 = vunpack.i.l.bf16 %v2380_v45  ;;  %v2391_v45 = vunpack.i.l.bf16 %v2390_v52  ;;  %v2458_v52 = vpack.i.bf16 %v3324_v2, %v3328_v4 }
 0x362   :  { %v1133_v48 = vsel %vm197_vm7, %v2381_v59, %v2376_v51  ;;  %v1134_v47 = vsel %vm197_vm7, %v2382_v1, %v2377_v56  ;;  %v1145_v49 = vsel %vm197_vm7, %v2376_v51, %v2381_v59  ;;  %v1146_v50 = vsel %vm197_vm7, %v2377_v56, %v2382_v1 }
 0x363   :  { %v2385_v61 = vpop.permute.xlu0 %2384  ;;  %v3362_v54 = vsel %vm2778_vm9, %v1133_v48, %v1109_v20  ;;  %v3366_v60 = vsel %vm2778_vm9, %v1134_v47, %v1110_v15  ;;  %v3370_v62 = vsel %vm2774_vm8, %v1145_v49, %v1093_v8  ;;  %v3374_v28 = vsel %vm2774_vm8, %v1146_v50, %v1094_v5 }
 0x364   :  { %v2438_v37 = vpack.i.bf16 %v3366_v60, %v3362_v54  ;;  %v2443_v41 = vpack.i.bf16 %v3374_v28, %v3370_v62  ;;  %v2387_v58 = vunpack.i.h.bf16 %v2385_v61  ;;  %v2386_v33 = vunpack.i.l.bf16 %v2385_v61 }
 0x365   :  { %v2157_v13 = vpack.c.bf16 %v3366_v60, %v3362_v54  ;;  %v2159_v9 = vpack.c.bf16 %v3374_v28, %v3370_v62  ;;  %v1095_v1 = vsel %vm176_vm2, %v2336_v36, %v2337_v11  ;;  %v1111_v59 = vsel %vm176_vm2, %v2337_v11, %v2336_v36 }
 0x366   :  { %2439 = vrot.lane.b32.xlu1 %v2438_v37, %s2623_s16  ;;  %2444 = vrot.lane.b32.xlu0 %v2443_v41, %s2623_s16  ;;  %v1096_v8 = vsel %vm176_vm2, %v2386_v33, %v2387_v58  ;;  %v1112_v20 = vsel %vm176_vm2, %v2387_v58, %v2386_v33  ;;  %v2498_v58 = vpack.i.bf16 %v3300_v53, %v3304_v16  ;;  %vm3900_vm2 = vcmask 130048  }
 0x367   :  { %v2395_v55 = vpop.permute.xlu0 %2394  ;;  %v2503_v33 = vpack.i.bf16 %v3334_v40, %v3338_v57  ;;  %vm3901_vm3 = vmmov %vm3900_vm2 }
 0x368   :  { %v2397_v56 = vunpack.i.h.bf16 %v2395_v55  ;;  %v2396_v51 = vunpack.i.l.bf16 %v2395_v55  ;;  %vm3902_vm4 = vmmov %vm3900_vm2 }
 0x369   :  { %vm3903_vm5 = vmmov %vm3900_vm2 }
 0x36a   :  { %v1135_v5 = vsel %vm197_vm7, %v2396_v51, %v2391_v45  ;;  %v1136_v15 = vsel %vm197_vm7, %v2397_v56, %v2392_v26  ;;  %v1147_v48 = vsel %vm197_vm7, %v2391_v45, %v2396_v51  ;;  %v1148_v47 = vsel %vm197_vm7, %v2392_v26, %v2397_v56  ;;  %v1345_v26 = vld [vmem:[%s3875_s8] sm:$0xff]  ;;  %v1346_v45 = vld [vmem:[%s3875_s8 + $0x8] sm:$0xff]  ;;  %vm3904_vm6 = vmmov %vm3900_vm2 }
 0x36b   :  { %v3398_v49 = vsel %vm2778_vm9, %v1135_v5, %v1111_v59  ;;  %v3402_v50 = vsel %vm2778_vm9, %v1136_v15, %v1112_v20  ;;  %v3406_v61 = vsel %vm2774_vm8, %v1147_v48, %v1095_v1  ;;  %v3410_v11 = vsel %vm2774_vm8, %v1148_v47, %v1096_v8  ;;  %v1574_v56 = vld [vmem:[%s3876_s9 + $0x8] sm:$0xff]  ;;  %v1573_v51 = vld [vmem:[%s3876_s9] sm:$0xff]  ;;  %v2400_v1 = vpop.permute.xlu1 %2399  ;;  %v2405_v59 = vpop.permute.xlu0 %2404  ;;  %vm3905_vm7 = vmmov %vm3900_vm2 }
 0x36c   :  { %v2448_v36 = vpack.i.bf16 %v3402_v50, %v3398_v49  ;;  %v2468_v37 = vpack.i.bf16 %v3410_v11, %v3406_v61  ;;  %v2205_v41 = vpack.c.bf16 %v3402_v50, %v3398_v49  ;;  %v2207_v32 = vpack.c.bf16 %v3410_v11, %v3406_v61  ;;  %vm3906_vm8 = vmmov %vm3900_vm2 }
 0x36d   :  { %v2493_v55 = vpack.i.bf16 %v3398_v49, %v3406_v61  ;;  %v2407_v5 = vunpack.i.h.bf16 %v2405_v59  ;;  %v2406_v15 = vunpack.i.l.bf16 %v2405_v59  ;;  %v2402_v47 = vunpack.i.h.bf16 %v2400_v1  ;;  %vm3907_vm9 = vmmov %vm3900_vm2 }
 0x36e   :  { %2449 = vrot.lane.b32.xlu1 %v2448_v36, %s2623_s16  ;;  %2469 = vrot.lane.b32.xlu0 %v2468_v37, %s2623_s16  ;;  %v2401_v36 = vunpack.i.l.bf16 %v2400_v1  ;;  %vm3912_vm10 = vmmov %vm3900_vm2 }
 0x36f   :  { %v2410_v8 = vpop.permute.xlu1 %2409  ;;  %v2415_v20 = vpop.permute.xlu0 %2414  ;;  %vm3913_vm11 = vmmov %vm3900_vm2 }
 0x370   :  { %v2417_v59 = vunpack.i.h.bf16 %v2415_v20  ;;  %v1066_v42 = vsel %vm3913_vm11, %v2402_v47, %v2407_v5  ;;  %vm3914_vm13 = vmmov %vm3900_vm2 }
 0x371   :  { %vm3915_vm14 = vmmov %vm3900_vm2 }
 0x372   :  { %2454 = vrot.lane.b32.xlu1 %v2453_v31, %s2624_s17  ;;  %2474 = vrot.lane.b32.xlu0 %v3241_v10, %s2624_s17  ;;  %v1342_v10 = vld [vmem:[%s3874_s7 + $0x8] sm:$0xff]  ;;  %vm3924_vm11 = vmmov %vm3900_vm2 }
 0x373   :  { %2078 = vmatprep.mubr.msk.f32.mxu0 %vm3900_vm2, %v1342_v10  ;;  %2104 = vmatprep.mubr.msk.f32.mxu1 %vm3901_vm3, %v1342_v10  ;;  %v1053_v10 = vsel %vm3902_vm4, %v2406_v15, %v2401_v36  ;;  %vm3916_vm3 = vmmov %vm3900_vm2 }
 0x374   :  { %vm3917_vm4 = vmmov %vm3900_vm2 }
 0x376   :  { %2459 = vrot.lane.b32.xlu1 %v2458_v52, %s2624_s17  ;;  %2484 = vrot.lane.b32.xlu0 %v3246_v25, %s2624_s17  ;;  %v2508_v25 = vpack.i.bf16 %v3366_v60, %v3374_v28 }
 0x37a   :  { %2464 = vrot.lane.b32.xlu1 %v3202_v12, %s2624_s17  ;;  %2499 = vrot.lane.b32.xlu0 %v2498_v58, %s2624_s17  ;;  %v2488_v12 = vpack.i.bf16 %v3362_v54, %v3370_v62 }
 0x37e   :  { %2479 = vrot.lane.b32.xlu1 %v3210_v17, %s2624_s17  ;;  %2504 = vrot.lane.b32.xlu0 %v2503_v33, %s2624_s17  ;;  %v2513_v17 = vpack.i.bf16 %v3402_v50, %v3410_v11 }
 0x382   :  { %2489 = vrot.lane.b32.xlu1 %v2488_v12, %s2624_s17  ;;  %2509 = vrot.lane.b32.xlu0 %v2508_v25, %s2624_s17  ;;  %v1054_v12 = vsel %vm3903_vm5, %v2407_v5, %v2402_v47  ;;  %vm3918_vm5 = vmmov %vm3900_vm2 }
 0x386   :  { %2494 = vrot.lane.b32.xlu1 %v2493_v55, %s2624_s17  ;;  %2514 = vrot.lane.b32.xlu0 %v2513_v17, %s2624_s17 }
 0x38a   :  { %1349 = vperm.xlu1 %2317, %v1345_v26   ;;  %1354 = vperm.xlu0 %2316, %v1346_v45  }
 0x38e   :  { %1582 = vperm.xlu1 %2317, %v1574_v56   ;;  %1577 = vperm.xlu0 %2316, %v1573_v51  }
 0x3c9   :  { %v2420_v48 = vpop.permute.xlu1 %2419  ;;  %v2425_v52 = vpop.permute.xlu0 %2424 }
 0x3ca   :  { %v2422_v37 = vunpack.i.h.bf16 %v2420_v48  ;;  %v2421_v31 = vunpack.i.l.bf16 %v2420_v48  ;;  %v2427_v58 = vunpack.i.h.bf16 %v2425_v52  ;;  %v2426_v33 = vunpack.i.l.bf16 %v2425_v52 }
 0x3cb   :  { %v2416_v48 = vunpack.i.l.bf16 %v2415_v20  ;;  %v2412_v52 = vunpack.i.h.bf16 %v2410_v8 }
 0x3cc   :  { %v1010_v25 = vsel %vm3904_vm6, %v2427_v58, %v2422_v37  ;;  %v1022_v55 = vsel %vm3905_vm7, %v2422_v37, %v2427_v58  ;;  %v1009_v17 = vsel %vm3906_vm8, %v2426_v33, %v2421_v31  ;;  %v1021_v26 = vsel %vm3907_vm9, %v2421_v31, %v2426_v33  ;;  %vm3919_vm6 = vmmov %vm3900_vm2 }
 0x3cd   :  { %v2131_v56 = vpack.c.bf16 %v1010_v25, %v1009_v17  ;;  %v2134_v51 = vpack.c.bf16 %v1022_v55, %v1021_v26  ;;  %v1065_v37 = vsel %vm3912_vm10, %v2401_v36, %v2406_v15  ;;  %v2137_v31 = vpack.c.bf16 %v1054_v12, %v1053_v10  ;;  %vm3920_vm7 = vmmov %vm3900_vm2 }
 0x3ce   :  { %v2411_v58 = vunpack.i.l.bf16 %v2410_v8  ;;  %v2140_v20 = vpack.c.bf16 %v1066_v42, %v1065_v37  ;;  %v1056_v15 = vsel %vm3915_vm14, %v2417_v59, %v2412_v52  ;;  %v1068_v37 = vsel %vm3920_vm7, %v2412_v52, %v2417_v59  ;;  %vm3921_vm8 = vmmov %vm3900_vm2 }
 0x3cf   :  { %2133 = vmatprep.subr.msk.bf16.mxu0 %vm3480_vm12, %v2131_v56  ;;  %vm3922_vm9 = vmmov %vm3900_vm2 }
 0x3d0   :  { %v2430_v33 = vpop.permute.xlu1 %2429  ;;  %v2435_v25 = vpop.permute.xlu0 %2434  ;;  %2136 = vmatpush1.bf16.msk.msra.mxu0 %vm3487_vm15, %v2134_v51  ;;  %v1055_v5 = vsel %vm3914_vm13, %v2416_v48, %v2411_v58  ;;  %v1067_v51 = vsel %vm3919_vm6, %v2411_v58, %v2416_v48  ;;  %vm3923_vm10 = vmmov %vm3900_vm2 }
 0x3d1   :  { %v2432_v3 = vunpack.i.h.bf16 %v2430_v33  ;;  %v2431_v55 = vunpack.i.l.bf16 %v2430_v33  ;;  %v2437_v17 = vunpack.i.h.bf16 %v2435_v25  ;;  %v2436_v26 = vunpack.i.l.bf16 %v2435_v25  ;;  %2139 = vmatprep.subr.msk.bf16.mxu0 %vm3480_vm12, %v2137_v31  ;;  %vm3925_vm13 = vmmov %vm3900_vm2 }
 0x3d2   :  { %v2185_v42 = vpack.c.bf16 %v1056_v15, %v1055_v5  ;;  %v2188_v31 = vpack.c.bf16 %v1068_v37, %v1067_v51  ;;  %vm3926_vm14 = vmmov %vm3900_vm2 }
 0x3d3   :  { %v1012_v47 = vsel %vm3900_vm2, %v2437_v17, %v2432_v3  ;;  %v1024_v8 = vsel %vm3916_vm3, %v2432_v3, %v2437_v17  ;;  %v1011_v36 = vsel %vm3917_vm4, %v2436_v26, %v2431_v55  ;;  %v1023_v10 = vsel %vm3918_vm5, %v2431_v55, %v2436_v26  ;;  %vm3927_vm3 = vmmov %vm3900_vm2 }
 0x3d4   :  { %v2179_v12 = vpack.c.bf16 %v1012_v47, %v1011_v36  ;;  %v2182_v56 = vpack.c.bf16 %v1024_v8, %v1023_v10  ;;  %2142 = vmatpush1.bf16.msk.msra.mxu0 %vm3487_vm15, %v2140_v20 }
 0x3d6   :  { %2181 = vmatprep.subr.msk.bf16.mxu1 %vm3480_vm12, %v2179_v12 }
 0x3d7   :  { %2184 = vmatpush1.bf16.msk.msra.mxu1 %vm3487_vm15, %v2182_v56 }
 0x3d8   :  { %v2440_v33 = vpop.permute.xlu1 %2439  ;;  %v2445_v25 = vpop.permute.xlu0 %2444  ;;  %2187 = vmatprep.subr.msk.bf16.mxu1 %vm3480_vm12, %v2185_v42 }
 0x3d9   :  { %v2442_v3 = vunpack.i.h.bf16 %v2440_v33  ;;  %v2441_v55 = vunpack.i.l.bf16 %v2440_v33  ;;  %v2447_v17 = vunpack.i.h.bf16 %v2445_v25  ;;  %v2446_v26 = vunpack.i.l.bf16 %v2445_v25 }
 0x3db   :  { %v1186_v48 = vsel %vm3921_vm8, %v2447_v17, %v2442_v3  ;;  %v1198_v59 = vsel %vm3922_vm9, %v2442_v3, %v2447_v17  ;;  %v1185_v52 = vsel %vm3923_vm10, %v2446_v26, %v2441_v55  ;;  %v1197_v58 = vsel %vm3924_vm11, %v2441_v55, %v2446_v26  ;;  %2190 = vmatpush1.bf16.msk.msra.mxu1 %vm3487_vm15, %v2188_v31  ;;  %vm3574_vm8 = vmpackc.low %vm2899_vm1, %vm2899_vm1 }
 0x3dc   :  { %v2143_v20 = vpack.c.bf16 %v1186_v48, %v1185_v52  ;;  %v2146_v5 = vpack.c.bf16 %v1198_v59, %v1197_v58  ;;  %vm3584_vm9 = vmpackc.low %vm2895_vm0, %vm2895_vm0 }
 0x3de   :  { %2145 = vmatprep.subr.msk.bf16.mxu0 %vm3480_vm12, %v2143_v20 }
 0x3df   :  { %2148 = vmatpush1.bf16.msk.msra.mxu0 %vm3487_vm15, %v2146_v5 }
 0x3e0   :  { %v2450_v15 = vpop.permute.xlu1 %2449  ;;  %2150 = vmatprep.subr.bf16.mxu0 %v2149_v24  ;;  %v2470_v36 = vpop.permute.xlu0 %2469 }
 0x3e1   :  { %v2452_v47 = vunpack.i.h.bf16 %v2450_v15  ;;  %v2451_v8 = vunpack.i.l.bf16 %v2450_v15  ;;  %v2472_v10 = vunpack.i.h.bf16 %v2470_v36  ;;  %v2471_v12 = vunpack.i.l.bf16 %v2470_v36 }
 0x3e3   :  { %2152 = vmatpush1.bf16.msra.mxu0 %v2151_v39  ;;  %v1188_v56 = vsel %vm3925_vm13, %v2472_v10, %v2452_v47  ;;  %v1200_v51 = vsel %vm3926_vm14, %v2452_v47, %v2472_v10  ;;  %v1187_v37 = vsel %vm3900_vm2, %v2471_v12, %v2451_v8  ;;  %v1199_v42 = vsel %vm3927_vm3, %v2451_v8, %v2471_v12 }
 0x3e4   :  { %v2455_v31 = vpop.permute.xlu1 %2454  ;;  %2154 = vmatprep.subr.bf16.mxu0 %v2153_v27  ;;  %v2191_v38 = vpack.c.bf16 %v1188_v56, %v1187_v37  ;;  %v2194_v53 = vpack.c.bf16 %v1200_v51, %v1199_v42  ;;  %v2475_v24 = vpop.permute.xlu0 %2474 }
 0x3e5   :  { %v2457_v35 = vunpack.i.h.bf16 %v2455_v31  ;;  %v2456_v27 = vunpack.i.l.bf16 %v2455_v31  ;;  %v2477_v0 = vunpack.i.h.bf16 %v2475_v24  ;;  %v2476_v19 = vunpack.i.l.bf16 %v2475_v24 }
 0x3e6   :  { %2193 = vmatprep.subr.msk.bf16.mxu1 %vm3480_vm12, %v2191_v38  ;;  %vm3928_vm12 = vcmask 916480  }
 0x3e7   :  { %2156 = vmatpush1.bf16.msra.mxu0 %v2155_v7  ;;  %2196 = vmatpush1.bf16.msk.msra.mxu1 %vm3487_vm15, %v2194_v53  ;;  %vm3929_vm15 = vmmov %vm3928_vm12 }
 0x3e8   :  { %v2460_v6 = vpop.permute.xlu1 %2459  ;;  %2158 = vmatprep.subr.bf16.mxu0 %v2157_v13  ;;  %v3548_v46 = vpop.permute.xlu0 %2484  ;;  %2198 = vmatprep.subr.bf16.mxu1 %v2197_v30  ;;  %v1225_v30 = vsel %vm3928_vm12, %v2456_v27, %v2457_v35  ;;  %v1241_v60 = vsel %vm3929_vm15, %v2457_v35, %v2456_v27  ;;  %vm3930_vm4 = vmmov %vm3928_vm12 }
 0x3e9   :  { %v2462_v62 = vunpack.i.h.bf16 %v2460_v6  ;;  %v2461_v28 = vunpack.i.l.bf16 %v2460_v6  ;;  %v1270_v13 = vsel %vm3930_vm4, %v2476_v19, %v2477_v0  ;;  %vm3931_vm5 = vmmov %vm3930_vm4  ;;  %v2487_v34 = vunpack.i.h.bf16 %v3548_v46 }
 0x3ea   :  { %vm3932_vm6 = vmmov %vm3930_vm4  ;;  %v2486_v55 = vunpack.i.l.bf16 %v3548_v46 }
 0x3eb   :  { %2160 = vmatpush1.bf16.msra.mxu0 %v2159_v9  ;;  %2200 = vmatpush1.bf16.msra.mxu1 %v2199_v29  ;;  %vm3933_vm7 = vmmov %vm3930_vm4 }
 0x3ec   :  { %v2465_v7 = vpop.permute.xlu1 %2464  ;;  %v2500_v54 = vpop.permute.xlu0 %2499  ;;  %2202 = vmatprep.subr.bf16.mxu1 %v2201_v22  ;;  %vm3938_vm1 = vmmov %vm3930_vm4 }
 0x3ed   :  { %v2467_v16 = vunpack.i.h.bf16 %v2465_v7  ;;  %v2466_v39 = vunpack.i.l.bf16 %v2465_v7  ;;  %v2502_v2 = vunpack.i.h.bf16 %v2500_v54  ;;  %v2501_v40 = vunpack.i.l.bf16 %v2500_v54  ;;  %vm3939_vm10 = vmmov %vm3938_vm1 }
 0x3ee   :  { %v1286_v44 = vsel %vm3938_vm1, %v2477_v0, %v2476_v19  ;;  %v1227_v3 = vsel %vm3939_vm10, %v2461_v28, %v2462_v62  ;;  %vm3940_vm11 = vmmov %vm3938_vm1 }
 0x3ef   :  { %v1285_v4 = vsel %vm3931_vm5, %v2467_v16, %v2466_v39  ;;  %v1226_v57 = vsel %vm3932_vm6, %v2501_v40, %v2502_v2  ;;  %v1242_v29 = vsel %vm3933_vm7, %v2502_v2, %v2501_v40  ;;  %2204 = vmatpush1.bf16.msra.mxu1 %v2203_v43  ;;  %v1269_v49 = vsel %vm3940_vm11, %v2466_v39, %v2467_v16  ;;  %vm3941_vm0 = vmmov %vm3938_vm1  ;;  %v1341_v16 = vld [vmem:[%s3874_s7] sm:$0xff]  ;;  %v1344_v2 = vld [vmem:[%s3874_s7 + $0x18] sm:$0xff] }
 0x3f0   :  { %v2480_v23 = vpop.permute.xlu1 %2479  ;;  %v2161_v22 = vpack.c.bf16 %v1242_v29, %v1241_v60  ;;  %v2164_v9 = vpack.c.bf16 %v1226_v57, %v1225_v30  ;;  %v2505_v33 = vpop.permute.xlu0 %2504  ;;  %2206 = vmatprep.subr.bf16.mxu1 %v2205_v41  ;;  %v2167_v50 = vpack.c.bf16 %v1286_v44, %v1285_v4  ;;  %v1243_v14 = vsel %vm3941_vm0, %v2462_v62, %v2461_v28  ;;  %vm3942_vm13 = vmmov %vm3941_vm0  ;;  %v1343_v40 = vld [vmem:[%s3874_s7 + $0x10] sm:$0xff] }
 0x3f1   :  { %v2482_v45 = vunpack.i.h.bf16 %v2480_v23  ;;  %v2481_v1 = vunpack.i.l.bf16 %v2480_v23  ;;  %v2507_v43 = vunpack.i.h.bf16 %v2505_v33  ;;  %v2506_v25 = vunpack.i.l.bf16 %v2505_v33  ;;  %vm3943_vm14 = vmmov %vm3941_vm0 }
 0x3f2   :  { %2163 = vmatprep.subr.msk.bf16.mxu0 %vm3574_vm8, %v2161_v22  ;;  %vm3944_vm2 = vmmov %vm3941_vm0  ;;  %v2170_v15 = vpack.c.bf16 %v1270_v13, %v1269_v49 }
 0x3f3   :  { %v1287_v41 = vsel %vm3942_vm13, %v2482_v45, %v2481_v1  ;;  %v1228_v17 = vsel %vm3943_vm14, %v2506_v25, %v2507_v43  ;;  %v1244_v26 = vsel %vm3944_vm2, %v2507_v43, %v2506_v25  ;;  %2166 = vmatpush1.bf16.msk.msra.mxu0 %vm3584_vm9, %v2164_v9  ;;  %2208 = vmatpush1.bf16.msra.mxu1 %v2207_v32  ;;  %vm3945_vm3 = vmmov %vm3941_vm0  ;;  %vm3955_vm13 = vcmask 130048  }
 0x3f4   :  { %v2490_v48 = vpop.permute.xlu1 %2489  ;;  %v2209_v59 = vpack.c.bf16 %v1244_v26, %v1243_v14  ;;  %v2212_v52 = vpack.c.bf16 %v1228_v17, %v1227_v3  ;;  %v2510_v5 = vpop.permute.xlu0 %2509  ;;  %2169 = vmatprep.subr.msk.bf16.mxu0 %vm3574_vm8, %v2167_v50  ;;  %v1288_v36 = vsel %vm3945_vm3, %v2487_v34, %v2486_v55  ;;  %vm3946_vm12 = vmmov %vm3941_vm0 }
 0x3f5   :  { %v2492_v58 = vunpack.i.h.bf16 %v2490_v48  ;;  %v2491_v20 = vunpack.i.l.bf16 %v2490_v48  ;;  %v2512_v47 = vunpack.i.h.bf16 %v2510_v5  ;;  %v2511_v8 = vunpack.i.l.bf16 %v2510_v5  ;;  %vm3947_vm15 = vmmov %vm3941_vm0 }
 0x3f6   :  { %2211 = vmatprep.subr.msk.bf16.mxu1 %vm3574_vm8, %v2209_v59  ;;  %vm3948_vm4 = vmmov %vm3941_vm0  ;;  %v2215_v11 = vpack.c.bf16 %v1288_v36, %v1287_v41  ;;  %v1593_v36 = vld [vmem:[%s3877_s10] sm:$0xff] }
 0x3f7   :  { %v1313_v10 = vsel %vm3946_vm12, %v2491_v20, %v2492_v58  ;;  %v1329_v12 = vsel %vm3947_vm15, %v2492_v58, %v2491_v20  ;;  %v1271_v61 = vsel %vm3948_vm4, %v2481_v1, %v2482_v45  ;;  %vm3949_vm5 = vmmov %vm3941_vm0  ;;  %2172 = vmatpush1.bf16.msk.msra.mxu0 %vm3584_vm9, %v2170_v15  ;;  %2214 = vmatpush1.bf16.msk.msra.mxu1 %vm3584_vm9, %v2212_v52 }
 0x3f8   :  { %v1314_v32 = vsel %vm3949_vm5, %v2511_v8, %v2512_v47  ;;  %vm3950_vm6 = vmmov %vm3941_vm0  ;;  %v2495_v51 = vpop.permute.xlu1 %2494  ;;  %v2515_v53 = vpop.permute.xlu0 %2514  ;;  %2217 = vmatprep.subr.msk.bf16.mxu1 %vm3574_vm8, %v2215_v11 }
 0x3f9   :  { %v1330_v56 = vsel %vm3950_vm6, %v2512_v47, %v2511_v8  ;;  %v2176_v42 = vpack.c.bf16 %v1314_v32, %v1313_v10  ;;  %v2497_v31 = vunpack.i.h.bf16 %v2495_v51  ;;  %v2496_v38 = vunpack.i.l.bf16 %v2495_v51  ;;  %vm3951_vm7 = vmmov %vm3941_vm0  ;;  %v1838_v10 = vld [vmem:[%s3879_s12] sm:$0x3] }
 0x3fa   :  { %v2173_v37 = vpack.c.bf16 %v1330_v56, %v1329_v12  ;;  %v1272_v24 = vsel %vm3951_vm7, %v2486_v55, %v2487_v34  ;;  %v2517_v6 = vunpack.i.h.bf16 %v2515_v53  ;;  %v2516_v46 = vunpack.i.l.bf16 %v2515_v53  ;;  %vm3952_vm1 = vmmov %vm3941_vm0  ;;  %v1594_v12 = vld [vmem:[%s3877_s10 + $0x8] sm:$0xff] }
 0x3fb   :  { %v2218_v35 = vpack.c.bf16 %v1272_v24, %v1271_v61  ;;  %v1315_v27 = vsel %vm3952_vm1, %v2496_v38, %v2497_v31  ;;  %vm3953_vm10 = vmmov %vm3941_vm0  ;;  %vm3957_vm6 = vcmask 1043456   ;;  %vm1847_vm7 = vcmask 162816  }
 0x3fc   :  { %v1331_v0 = vsel %vm3953_vm10, %v2497_v31, %v2496_v38  ;;  %2175 = vmatprep.subr.msk.bf16.mxu0 %vm3574_vm8, %v2173_v37  ;;  %vm3954_vm11 = vmmov %vm3941_vm0  ;;  %v1332_v7 = vsel %vm3941_vm0, %v2517_v6, %v2516_v46 }
 0x3fd   :  { %v1316_v19 = vsel %vm3954_vm11, %v2516_v46, %v2517_v6  ;;  %2178 = vmatpush1.bf16.msk.msra.mxu0 %vm3584_vm9, %v2176_v42  ;;  %v2221_v39 = vpack.c.bf16 %v1332_v7, %v1331_v0  ;;  %2220 = vmatpush1.bf16.msk.msra.mxu1 %vm3584_vm9, %v2218_v35  ;;  %vm3956_vm14 = vmmov %vm3955_vm13 }
 0x3fe   :  { %v2224_v54 = vpack.c.bf16 %v1316_v19, %v1315_v27  ;;  %vm3958_vm1 = vmmov %vm3957_vm6 }
 0x3ff   :  { %2223 = vmatprep.subr.msk.bf16.mxu1 %vm3574_vm8, %v2221_v39  ;;  %vm3959_vm10 = vmmov %vm3958_vm1 }
 0x400   :  { %1428 = vmatmul.mubr.f32.vlgmr.msra.gmra.mrb[4].mxu0 %v1341_v16  ;;  %vm3960_vm11 = vmmov %vm3958_vm1 }
 0x401   :  { %2079 = vmatprep.mubr.msk.f32.mxu0 %vm3955_vm13, %v1344_v2  ;;  %2226 = vmatpush1.bf16.msk.msra.mxu1 %vm3584_vm9, %v2224_v54 }
 0x404   :  { %1434 = vmatmul.mubr.f32.gmra.mrb[6].mxu0 %v1343_v40  ;;  %1505 = vmatmul.mubr.f32.vlgmr.msra.gmra.mrb[4].mxu1 %v1341_v16 }
 0x405   :  { %1919 = vmatprep.mubr.f32.mxu0 %v2625_v18  ;;  %2105 = vmatprep.mubr.msk.f32.mxu1 %vm3956_vm14, %v1344_v2 }
 0x408   :  { %1511 = vmatmul.mubr.f32.gmra.mrb[6].mxu1 %v1343_v40 }
 0x409   :  { %2010 = vmatprep.mubr.f32.mxu1 %v2625_v18  ;;  %v1350_v30 = vpop.permute.xlu1 %1349  ;;  %v1355_v57 = vpop.permute.xlu0 %1354 }
 0x40d   :  { %v3687_v61 = vpop.permute.xlu1 %1582  ;;  %v1578_v11 = vpop.permute.xlu0 %1577 }
 0x4d3   :  { %v1429_v60 = vpop.f32.mrb[4].mxu0 }
 0x4d4   :  { %v3648_v62 = vadd.f32 %v1429_v60, %v1350_v30  ;;  %v1431_v28 = vpop.f32.mrb[5].mxu0 }
 0x4d5   :  { %v3650_v13 = vadd.f32 %v1431_v28, %v1350_v30 }
 0x4d6   :  { %v1529_v4 = vmul.f32 %v3648_v62, %v3648_v62 }
 0x4d7   :  { %v1517_v29 = vadd.f32 %v3650_v13, %v3648_v62  ;;  %v1530_v23 = vmul.f32 %v3650_v13, %v3650_v13  ;;  %v1435_v63 = vpop.f32.mrb[6].mxu0  ;;  %v1506_v18 = vpop.f32.mrb[4].mxu1 }
 0x4d8   :  { %v3658_v22 = vadd.f32 %v1435_v63, %v1355_v57  ;;  %v1437_v9 = vpop.f32.mrb[7].mxu0  ;;  %v1507_v45 = vadd.f32 %v1506_v18, %v1350_v30  ;;  %v1508_v33 = vpop.f32.mrb[5].mxu1 }
 0x4d9   :  { %v3660_v1 = vadd.f32 %v1437_v9, %v1355_v57  ;;  %v1537_v21 = vadd.f32 %v1530_v23, %v1529_v4  ;;  %v1509_v34 = vadd.f32 %v1508_v33, %v1350_v30 }
 0x4da   :  { %v1531_v44 = vmul.f32 %v3658_v22, %v3658_v22  ;;  %v1533_v43 = vmul.f32 %v1507_v45, %v1507_v45  ;;  %v1518_v55 = vadd.f32 %v1517_v29, %v1507_v45 }
 0x4db   :  { %v1522_v25 = vadd.f32 %v3660_v1, %v3658_v22  ;;  %v1532_v3 = vmul.f32 %v3660_v1, %v3660_v1  ;;  %v1512_v49 = vpop.f32.mrb[6].mxu1  ;;  %v1534_v50 = vmul.f32 %v1509_v34, %v1509_v34 }
 0x4dc   :  { %v3668_v14 = vadd.f32 %v1512_v49, %v1355_v57  ;;  %v1514_v41 = vpop.f32.mrb[7].mxu1  ;;  %v1519_v17 = vadd.f32 %v1518_v55, %v1509_v34  ;;  %v1538_v26 = vadd.f32 %v1537_v21, %v1533_v43 }
 0x4dd   :  { %v1542_v48 = vadd.f32 %v1532_v3, %v1531_v44  ;;  %v3670_v59 = vadd.f32 %v1514_v41, %v1355_v57 }
 0x4de   :  { %v1535_v52 = vmul.f32 %v3668_v14, %v3668_v14  ;;  %1520 = vadd.xlane.f32.xlu1 %v1519_v17  ;;  %v1539_v58 = vadd.f32 %v1538_v26, %v1534_v50  ;;  %v1523_v20 = vadd.f32 %v1522_v25, %v3668_v14 }
 0x4df   :  { %v1536_v5 = vmul.f32 %v3670_v59, %v3670_v59 }
 0x4e0   :  { %1540 = vadd.xlane.f32.xlu0 %v1539_v58  ;;  %v1543_v15 = vadd.f32 %v1542_v48, %v1535_v52  ;;  %v1524_v47 = vadd.f32 %v1523_v20, %v3670_v59 }
 0x4e2   :  { %v1544_v8 = vadd.f32 %v1543_v15, %v1536_v5 }
 0x4e4   :  { %1525 = vadd.xlane.f32.xlu0 %v1524_v47  ;;  %1545 = vadd.xlane.f32.xlu1 %v1544_v8 }
 0x4f5   :  { %1597 = vperm.xlu1 %2317, %v1593_v36  }
 0x4f9   :  { %1844 = vperm.xlu1 %2317, %v1838_v10  }
 0x4fa   :  { %1602 = vperm.xlu0 %2316, %v1594_v12  }
 0x56b   :  { %v1521_v32 = vpop.xlane.xlu1 %1520 }
 0x56c   :  { %v1527_v56 = vmul.f32 0.001953125, %v1521_v32 }
 0x56d   :  { %v1541_v51 = vpop.xlane.xlu0 %1540 }
 0x56e   :  { %v1547_v37 = vmul.f32 0.001953125, %v1541_v51  ;;  %v1549_v42 = vmul.f32 %v1527_v56, %v1527_v56  ;;  %v1553_v19 = vsub.f32 %v3648_v62, %v1527_v56  ;;  %v1554_v7 = vsub.f32 %v3650_v13, %v1527_v56 }
 0x56f   :  { %v1557_v16 = vsub.f32 %v1507_v45, %v1527_v56  ;;  %v1558_v39 = vsub.f32 %v1509_v34, %v1527_v56 }
 0x570   :  { %v1551_v31 = vsub.f32 %v1547_v37, %v1549_v42 }
 0x571   :  { %v1526_v38 = vpop.xlane.xlu0 %1525  ;;  %v1546_v53 = vpop.xlane.xlu1 %1545 }
 0x572   :  { %v1561_v24 = vadd.f32 1e-05, %v1551_v31  ;;  %v1528_v6 = vmul.f32 0.001953125, %v1526_v38  ;;  %v1548_v35 = vmul.f32 0.001953125, %v1546_v53 }
 0x574   :  { %2558 = vrsqrt.f32 %v1561_v24  ;;  %v1550_v46 = vmul.f32 %v1528_v6, %v1528_v6  ;;  %v1555_v50 = vsub.f32 %v3658_v22, %v1528_v6  ;;  %v1556_v41 = vsub.f32 %v3660_v1, %v1528_v6 }
 0x575   :  { %v1598_v23 = vpop.permute.xlu1 %1597  ;;  %v1559_v17 = vsub.f32 %v3668_v14, %v1528_v6  ;;  %v1560_v47 = vsub.f32 %v3670_v59, %v1528_v6 }
 0x576   :  { %v1552_v27 = vsub.f32 %v1548_v35, %v1550_v46 }
 0x578   :  { %v1562_v0 = vadd.f32 1e-05, %v1552_v27 }
 0x579   :  { %v1603_v1 = vpop.permute.xlu0 %1602 }
 0x57a   :  { %2560 = vrsqrt.f32 %v1562_v0 }
 0x57e   :  { %v2559_v54 = vpop.eup %2558 }
 0x57f   :  { %v1565_v2 = vmul.f32 %v2559_v54, %v1553_v19  ;;  %v1566_v40 = vmul.f32 %v2559_v54, %v1554_v7  ;;  %v1569_v30 = vmul.f32 %v2559_v54, %v1557_v16  ;;  %v1570_v60 = vmul.f32 %v2559_v54, %v1558_v39 }
 0x581   :  { %v1585_v28 = vmul.f32 %v1578_v11, %v1565_v2  ;;  %v1586_v4 = vmul.f32 %v1578_v11, %v1566_v40  ;;  %v1589_v57 = vmul.f32 %v1578_v11, %v1569_v30  ;;  %v1590_v29 = vmul.f32 %v1578_v11, %v1570_v60 }
 0x583   :  { %v3691_v63 = vadd.f32 %v1598_v23, %v1585_v28  ;;  %v3693_v18 = vadd.f32 %v1598_v23, %v1586_v4  ;;  %v3695_v62 = vadd.f32 %v1598_v23, %v1589_v57  ;;  %v3697_v13 = vadd.f32 %v1598_v23, %v1590_v29 }
 0x584   :  { %v2561_v25 = vpop.eup %2560 }
 0x585   :  { %v3700_v9 = vmul.f32 0.70710677, %v3691_v63  ;;  %v3703_v45 = vmul.f32 0.70710677, %v3693_v18  ;;  %v3706_v33 = vmul.f32 0.70710677, %v3695_v62  ;;  %v1567_v58 = vmul.f32 %v2561_v25, %v1555_v50 }
 0x586   :  { %v3709_v21 = vmul.f32 0.70710677, %v3697_v13  ;;  %v1568_v5 = vmul.f32 %v2561_v25, %v1556_v41  ;;  %v1571_v15 = vmul.f32 %v2561_v25, %v1559_v17  ;;  %v1572_v36 = vmul.f32 %v2561_v25, %v1560_v47 }
 0x587   :  { %v1621_v44 = vand.u32 2147483647, %v3700_v9  ;;  %v1622_v34 = vand.u32 2147483647, %v3703_v45  ;;  %v1625_v43 = vand.u32 2147483647, %v3706_v33  ;;  %v1587_v22 = vmul.f32 %v3687_v61, %v1567_v58 }
 0x588   :  { %v3715_v3 = vand.u32 2147483647, %v3709_v21  ;;  %v1588_v14 = vmul.f32 %v3687_v61, %v1568_v5  ;;  %v1591_v12 = vmul.f32 %v3687_v61, %v1571_v15  ;;  %v1592_v11 = vmul.f32 %v3687_v61, %v1572_v36 }
 0x589   :  { %v1629_v55 = vmul.f32 0.3275911, %v1621_v44  ;;  %v1633_v49 = vmul.f32 0.3275911, %v1625_v43  ;;  %v1630_v26 = vmul.f32 0.3275911, %v1622_v34  ;;  %v3726_v32 = vadd.f32 %v1603_v1, %v1587_v22 }
 0x58a   :  { %v1634_v20 = vmul.f32 0.3275911, %v3715_v3  ;;  %v3728_v56 = vadd.f32 %v1603_v1, %v1588_v14  ;;  %v3730_v51 = vadd.f32 %v1603_v1, %v1591_v12  ;;  %v1733_v59 = vsub.f32 0.0, %v1621_v44 }
 0x58b   :  { %v1637_v48 = vadd.f32 1.0, %v1629_v55  ;;  %v1641_v52 = vadd.f32 1.0, %v1633_v49  ;;  %v1638_v8 = vadd.f32 1.0, %v1630_v26  ;;  %v3732_v37 = vadd.f32 %v1603_v1, %v1592_v11 }
 0x58c   :  { %v1642_v10 = vadd.f32 1.0, %v1634_v20  ;;  %v3735_v42 = vmul.f32 0.70710677, %v3726_v32  ;;  %v1734_v31 = vsub.f32 0.0, %v1622_v34  ;;  %v3738_v38 = vmul.f32 0.70710677, %v3728_v56 }
 0x58d   :  { %2562 = vrcp.f32 %v1637_v48  ;;  %v3741_v61 = vmul.f32 0.70710677, %v3730_v51  ;;  %v1737_v53 = vsub.f32 0.0, %v1625_v43  ;;  %v3744_v24 = vmul.f32 0.70710677, %v3732_v37 }
 0x58e   :  { %2564 = vrcp.f32 %v1641_v52  ;;  %v1623_v6 = vand.u32 2147483647, %v3735_v42  ;;  %v1624_v46 = vand.u32 2147483647, %v3738_v38  ;;  %v1738_v0 = vsub.f32 0.0, %v3715_v3 }
 0x58f   :  { %2566 = vrcp.f32 %v1638_v8  ;;  %v1627_v35 = vand.u32 2147483647, %v3741_v61  ;;  %v1741_v19 = vmul.f32 %v1733_v59, %v1621_v44  ;;  %v1628_v7 = vand.u32 2147483647, %v3744_v24 }
 0x590   :  { %2568 = vrcp.f32 %v1642_v10  ;;  %v1631_v16 = vmul.f32 0.3275911, %v1623_v6  ;;  %v1742_v54 = vmul.f32 %v1734_v31, %v1622_v34  ;;  %v1632_v2 = vmul.f32 0.3275911, %v1624_v46 }
 0x591   :  { %v1635_v40 = vmul.f32 0.3275911, %v1627_v35  ;;  %v1745_v60 = vmul.f32 %v1737_v53, %v1625_v43  ;;  %v1636_v28 = vmul.f32 0.3275911, %v1628_v7  ;;  %v1735_v57 = vsub.f32 0.0, %v1623_v6 }
 0x592   :  { %v1639_v4 = vadd.f32 1.0, %v1631_v16  ;;  %v1640_v25 = vadd.f32 1.0, %v1632_v2  ;;  %v1749_v44 = vmul.f32 1.442695, %v1741_v19  ;;  %v1736_v50 = vsub.f32 0.0, %v1624_v46 }
 0x593   :  { %v1643_v55 = vadd.f32 1.0, %v1635_v40  ;;  %v1644_v49 = vadd.f32 1.0, %v1636_v28  ;;  %v1746_v17 = vmul.f32 %v1738_v0, %v3715_v3  ;;  %v1757_v43 = vmul.f32 1.442695, %v1745_v60 }
 0x594   :  { %2570 = vrcp.f32 %v1639_v4  ;;  %v1739_v48 = vsub.f32 0.0, %v1627_v35  ;;  %v1743_v52 = vmul.f32 %v1735_v57, %v1623_v6  ;;  %v1751_v15 = vmul.f32 1.442695, %v1742_v54 }
 0x595   :  { %2572 = vrcp.f32 %v1640_v25  ;;  %v1740_v47 = vsub.f32 0.0, %v1628_v7  ;;  %v1744_v8 = vmul.f32 %v1736_v50, %v1624_v46  ;;  %v1759_v22 = vmul.f32 1.442695, %v1746_v17 }
 0x596   :  { %2574 = vrcp.f32 %v1643_v55  ;;  %v1747_v1 = vmul.f32 %v1739_v48, %v1627_v35  ;;  %v1753_v14 = vmul.f32 1.442695, %v1743_v52  ;;  %v3769_v31 = vmul.f32 0.5, %v3691_v63 }
 0x597   :  { %v3749_v27 = vpop.eup %2562  ;;  %2576 = vrcp.f32 %v1644_v49  ;;  %v1748_v6 = vmul.f32 %v1740_v47, %v1628_v7  ;;  %v1755_v46 = vmul.f32 1.442695, %v1744_v8  ;;  %v3776_v54 = vmul.f32 0.5, %v3693_v18 }
 0x598   :  { %v1661_v39 = vmul.f32 1.0614054, %v3749_v27  ;;  %v3754_v30 = vpop.eup %2564  ;;  %2578 = vpow2.f32 %v1749_v44  ;;  %v1761_v2 = vmul.f32 1.442695, %v1747_v1  ;;  %vm1781_vm8 = vcmp.ge.f32.partialorder %v3700_v9, 0.0 }
 0x599   :  { %v1665_v29 = vmul.f32 1.0614054, %v3754_v30  ;;  %v3759_v26 = vpop.eup %2566  ;;  %2580 = vpow2.f32 %v1757_v43  ;;  %vm1782_vm9 = vcmp.ge.f32.partialorder %v3703_v45, 0.0  ;;  %vm1785_vm2 = vcmp.ge.f32.partialorder %v3706_v33, 0.0 }
 0x59a   :  { %v1669_v23 = vadd.f32 -1.4531521, %v1661_v39  ;;  %v3761_v58 = vpop.eup %2568  ;;  %v1662_v10 = vmul.f32 1.0614054, %v3759_v26  ;;  %2582 = vpow2.f32 %v1751_v15  ;;  %vm1786_vm3 = vcmp.ge.f32.partialorder %v3709_v21, 0.0 }
 0x59b   :  { %v1673_v41 = vadd.f32 -1.4531521, %v1665_v29  ;;  %v1666_v12 = vmul.f32 1.0614054, %v3761_v58  ;;  %2584 = vpow2.f32 %v1759_v22  ;;  %v1763_v29 = vmul.f32 1.442695, %v1748_v6 }
 0x59c   :  { %v1677_v34 = vmul.f32 %v3749_v27, %v1669_v23  ;;  %v1670_v53 = vadd.f32 -1.4531521, %v1662_v10  ;;  %2586 = vpow2.f32 %v1753_v14  ;;  %vm1783_vm12 = vcmp.ge.f32.partialorder %v3735_v42, 0.0 }
 0x59d   :  { %v1681_v20 = vmul.f32 %v3754_v30, %v1673_v41  ;;  %v1674_v0 = vadd.f32 -1.4531521, %v1666_v12  ;;  %2588 = vpow2.f32 %v1755_v46  ;;  %v3803_v46 = vmul.f32 0.5, %v3695_v62 }
 0x59e   :  { %v1685_v5 = vadd.f32 1.4214138, %v1677_v34  ;;  %v1678_v35 = vmul.f32 %v3759_v26, %v1670_v53  ;;  %v3773_v39 = vpop.eup %2570  ;;  %2590 = vpow2.f32 %v1761_v2  ;;  %vm1784_vm15 = vcmp.ge.f32.partialorder %v3738_v38, 0.0 }
 0x59f   :  { %v1689_v36 = vadd.f32 1.4214138, %v1681_v20  ;;  %v1682_v63 = vmul.f32 %v3761_v58, %v1674_v0  ;;  %v3779_v40 = vpop.eup %2572  ;;  %v1663_v28 = vmul.f32 1.0614054, %v3773_v39  ;;  %2592 = vpow2.f32 %v1763_v29 }
 0x5a0   :  { %v1693_v3 = vmul.f32 %v3749_v27, %v1685_v5  ;;  %v1686_v4 = vadd.f32 1.4214138, %v1678_v35  ;;  %v3783_v57 = vpop.eup %2574  ;;  %v1664_v23 = vmul.f32 1.0614054, %v3779_v40  ;;  %v1811_v33 = vmul.f32 0.5, %v3730_v51 }
 0x5a1   :  { %v1697_v11 = vmul.f32 %v3754_v30, %v1689_v36  ;;  %v1690_v18 = vadd.f32 1.4214138, %v1682_v63  ;;  %v3786_v25 = vpop.eup %2576  ;;  %v1667_v49 = vmul.f32 1.0614054, %v3783_v57  ;;  %v1671_v50 = vadd.f32 -1.4531521, %v1663_v28 }
 0x5a2   :  { %v1701_v59 = vadd.f32 -0.28449672, %v1693_v3  ;;  %v2579_v41 = vpop.eup %2578  ;;  %v1672_v34 = vadd.f32 -1.4531521, %v1664_v23  ;;  %v1694_v17 = vmul.f32 %v3759_v26, %v1686_v4  ;;  %v1668_v43 = vmul.f32 1.0614054, %v3786_v25 }
 0x5a3   :  { %v1705_v19 = vadd.f32 -0.28449672, %v1697_v11  ;;  %v1698_v48 = vmul.f32 %v3761_v58, %v1690_v18  ;;  %v1675_v5 = vadd.f32 -1.4531521, %v1667_v49  ;;  %v1679_v15 = vmul.f32 %v3773_v39, %v1671_v50  ;;  %v2581_v47 = vpop.eup %2580 }
 0x5a4   :  { %v1709_v16 = vmul.f32 %v3749_v27, %v1701_v59  ;;  %v1702_v8 = vadd.f32 -0.28449672, %v1694_v17  ;;  %v1676_v36 = vadd.f32 -1.4531521, %v1668_v43  ;;  %v2583_v12 = vpop.eup %2582  ;;  %vm1787_vm4 = vcmp.ge.f32.partialorder %v3741_v61, 0.0 }
 0x5a5   :  { %v1713_v7 = vmul.f32 %v3754_v30, %v1705_v19  ;;  %v1706_v3 = vadd.f32 -0.28449672, %v1698_v48  ;;  %v1683_v1 = vmul.f32 %v3783_v57, %v1675_v5  ;;  %v1687_v14 = vadd.f32 1.4214138, %v1679_v15  ;;  %v2585_v6 = vpop.eup %2584 }
 0x5a6   :  { %v1717_v60 = vadd.f32 0.2548296, %v1709_v16  ;;  %v1684_v59 = vmul.f32 %v3786_v25, %v1676_v36  ;;  %v2587_v16 = vpop.eup %2586  ;;  %vm1788_vm5 = vcmp.ge.f32.partialorder %v3744_v24, 0.0  ;;  %v1812_v51 = vmul.f32 0.5, %v3732_v37 }
 0x5a7   :  { %v1721_v55 = vadd.f32 0.2548296, %v1713_v7  ;;  %v1714_v53 = vmul.f32 %v3761_v58, %v1706_v3  ;;  %v1691_v0 = vadd.f32 1.4214138, %v1683_v1  ;;  %v1695_v19 = vmul.f32 %v3773_v39, %v1687_v14  ;;  %v2589_v18 = vpop.eup %2588 }
 0x5a8   :  { %v1725_v44 = vmul.f32 %v3749_v27, %v1717_v60  ;;  %v1680_v27 = vmul.f32 %v3779_v40, %v1672_v34  ;;  %v1692_v7 = vadd.f32 1.4214138, %v1684_v59 }
 0x5a9   :  { %v1729_v52 = vmul.f32 %v3754_v30, %v1721_v55  ;;  %v1710_v30 = vmul.f32 %v3759_v26, %v1702_v8  ;;  %v1722_v60 = vadd.f32 0.2548296, %v1714_v53  ;;  %v1699_v4 = vmul.f32 %v3783_v57, %v1691_v0 }
 0x5aa   :  { %v1765_v20 = vmul.f32 %v2579_v41, %v1725_v44  ;;  %v1688_v11 = vadd.f32 1.4214138, %v1680_v27  ;;  %v1703_v23 = vadd.f32 -0.28449672, %v1695_v19  ;;  %v1700_v49 = vmul.f32 %v3786_v25, %v1692_v7 }
 0x5ab   :  { %v3796_v22 = vmul.f32 %v2581_v47, %v1729_v52  ;;  %v1718_v63 = vadd.f32 0.2548296, %v1710_v30  ;;  %v1707_v2 = vadd.f32 -0.28449672, %v1699_v4  ;;  %v1730_v41 = vmul.f32 %v3761_v58, %v1722_v60 }
 0x5ac   :  { %v1773_v10 = vsub.f32 1.0, %v1765_v20  ;;  %v1696_v35 = vmul.f32 %v3779_v40, %v1688_v11  ;;  %v1711_v50 = vmul.f32 %v3773_v39, %v1703_v23  ;;  %v1810_v8 = vmul.f32 0.5, %v3697_v13 }
 0x5ad   :  { %v1777_v28 = vsub.f32 1.0, %v3796_v22  ;;  %v1726_v44 = vmul.f32 %v3759_v26, %v1718_v63  ;;  %v1715_v17 = vmul.f32 %v3783_v57, %v1707_v2  ;;  %v1708_v26 = vadd.f32 -0.28449672, %v1700_v49  ;;  %v2591_v22 = vpop.eup %2590 }
 0x5ae   :  { %v1789_v55 = vsub.f32 0.0, %v1773_v10  ;;  %v1704_v62 = vadd.f32 -0.28449672, %v1696_v35  ;;  %v1719_v43 = vadd.f32 0.2548296, %v1711_v50  ;;  %v1770_v48 = vmul.f32 %v2585_v6, %v1730_v41  ;;  %v2593_v53 = vpop.eup %2592 }
 0x5af   :  { %v1766_v34 = vmul.f32 %v2583_v12, %v1726_v44  ;;  %v1793_v52 = vsub.f32 0.0, %v1777_v28  ;;  %v1723_v15 = vadd.f32 0.2548296, %v1715_v17  ;;  %v1716_v58 = vmul.f32 %v3786_v25, %v1708_v26 }
 0x5b0   :  { %v1712_v29 = vmul.f32 %v3779_v40, %v1704_v62  ;;  %v1797_v20 = vsel %vm1781_vm8, %v1773_v10, %v1789_v55  ;;  %v1727_v47 = vmul.f32 %v3773_v39, %v1719_v43  ;;  %v1778_v27 = vsub.f32 1.0, %v1770_v48 }
 0x5b1   :  { %v1774_v5 = vsub.f32 1.0, %v1766_v34  ;;  %v1731_v1 = vmul.f32 %v3783_v57, %v1723_v15  ;;  %v1724_v10 = vadd.f32 0.2548296, %v1716_v58  ;;  %v1813_v11 = vadd.f32 1.0, %v1797_v20 }
 0x5b2   :  { %v1720_v9 = vadd.f32 0.2548296, %v1712_v29  ;;  %v1767_v14 = vmul.f32 %v2587_v16, %v1727_v47  ;;  %v1794_v12 = vsub.f32 0.0, %v1778_v27  ;;  %v1807_v30 = vmul.f32 0.5, %v3726_v32 }
 0x5b3   :  { %v1790_v3 = vsub.f32 0.0, %v1774_v5  ;;  %v1801_v13 = vsel %vm1785_vm2, %v1777_v28, %v1793_v52  ;;  %v1771_v6 = vmul.f32 %v2591_v22, %v1731_v1  ;;  %v1732_v0 = vmul.f32 %v3786_v25, %v1724_v10 }
 0x5b4   :  { %v1728_v36 = vmul.f32 %v3779_v40, %v1720_v9  ;;  %v1775_v40 = vsub.f32 1.0, %v1767_v14  ;;  %v1808_v57 = vmul.f32 0.5, %v3728_v56  ;;  %v1802_v45 = vsel %vm1786_vm3, %v1778_v27, %v1794_v12 }
 0x5b5   :  { %v1798_v59 = vsel %vm1782_vm9, %v1774_v5, %v1790_v3  ;;  %v1779_v35 = vsub.f32 1.0, %v1771_v6  ;;  %v1772_v63 = vmul.f32 %v2593_v53, %v1732_v0  ;;  %v1817_v7 = vadd.f32 1.0, %v1801_v13 }
 0x5b6   :  { %v1768_v39 = vmul.f32 %v2589_v18, %v1728_v36  ;;  %v1814_v16 = vadd.f32 1.0, %v1798_v59  ;;  %v1791_v32 = vsub.f32 0.0, %v1775_v40  ;;  %v1821_v25 = vmul.f32 %v1813_v11, %v3769_v31  ;;  %v1845_v36 = vpop.permute.xlu1 %1844 }
 0x5b7   :  { %v1795_v28 = vsub.f32 0.0, %v1779_v35  ;;  %v1780_v4 = vsub.f32 1.0, %v1772_v63  ;;  %v1818_v18 = vadd.f32 1.0, %v1802_v45  ;;  %v1825_v31 = vmul.f32 %v1817_v7, %v3803_v46  ;;  %v2110_v46 = vld [vmem:[%s3869_s2 + $0x8] sm:$0xff] }
 0x5b8   :  { %v1776_v19 = vsub.f32 1.0, %v1768_v39  ;;  %v1799_v42 = vsel %vm1783_vm12, %v1775_v40, %v1791_v32  ;;  %v1822_v21 = vmul.f32 %v1814_v16, %v3776_v54  ;;  %v1829_v41 = vmin.f32 %v1821_v25, 1.0  ;;  %v1839_v54 = vld [vmem:[%s3869_s2] sm:$0xff]  ;;  %s2626_s2 = smov [#allocation2]  }
 0x5b9   :  { %v1815_v56 = vadd.f32 1.0, %v1799_v42  ;;  %v1803_v55 = vsel %vm1787_vm4, %v1779_v35, %v1795_v28  ;;  %v1796_v44 = vsub.f32 0.0, %v1780_v4  ;;  %v1826_v17 = vmul.f32 %v1818_v18, %v1810_v8  ;;  %v1837_v8 = vld [vmem:[%s3878_s11] sm:$0x3]  ;;  %s2035_s11 = sshll.u32 %s2626_s2, 4  ;;  %s2036_s11 = int_to_ptr.vmem [resolvable:$true] %s2035_s11 }
 0x5ba   :  { %v1792_v60 = vsub.f32 0.0, %v1776_v19  ;;  %v1819_v38 = vadd.f32 1.0, %v1803_v55  ;;  %v1830_v43 = vmin.f32 %v1822_v21, 1.0  ;;  %v1833_v20 = vmin.f32 %v1825_v31, 1.0  ;;  %s2594_s6 = scalar_lea.vmem %s2036_s11, 128  ;;  %p2599_p1 = scmp.lt.s32.totalorder %s2036_s11, %s2036_s11 }
 0x5bb   :  { %v1823_v49 = vmul.f32 %v1815_v56, %v1807_v30  ;;  %v1804_v50 = vsel %vm1788_vm5, %v1780_v4, %v1796_v44  ;;  %v1841_v9 = vcombine.high %v1839_v54, %v1839_v54  ;;  %v1834_v5 = vmin.f32 %v1826_v17, 1.0  ;;  %p2595_p0 = scmp.ne.s32.totalorder %s2036_s11, %s2594_s6  ;;  %p2600_p2 = scmp.lt.s32.totalorder %s2594_s6, %s2594_s6 }
 0x5bc   :  { %v1800_v23 = vsel %vm1784_vm15, %v1776_v19, %v1792_v60  ;;  %v1827_v61 = vmul.f32 %v1819_v38, %v1811_v33  ;;  %v1820_v34 = vadd.f32 1.0, %v1804_v50  ;;  %v1941_v27 = vcombine.high %v2110_v46, %v2110_v46 }
 0x5bd   :  { %v1816_v62 = vadd.f32 1.0, %v1800_v23  ;;  %v1831_v29 = vmin.f32 %v1823_v49, 1.0  ;;  %p2601_p3 = por %p2600_p2, %p2599_p1 }
 0x5be   :  { %v1835_v24 = vmin.f32 %v1827_v61, 1.0  ;;  %v1828_v48 = vmul.f32 %v1820_v34, %v1812_v51 }
 0x5bf   :  { %v1824_v2 = vmul.f32 %v1816_v62, %v1808_v57  ;;  %v2229_v37 = vpack.c.bf16 %v1831_v29, %v1829_v41  ;;  %p2602_p4 = pnand %p2601_p3, %p2595_p0 }
 0x5c0   :  { %v1836_v15 = vmin.f32 %v1828_v48, 1.0  ;;  %v2233_v47 = vpack.c.bf16 %v1835_v24, %v1833_v20 }
 0x5c1   :  { %v1832_v26 = vmin.f32 %v1824_v2, 1.0 }
 0x5c2   :  { %v2231_v58 = vpack.c.bf16 %v1836_v15, %v1834_v5 }
 0x5c3   :  { %v2227_v52 = vpack.c.bf16 %v1832_v26, %v1830_v43 }
 0x5c4   :  { %2232 = vmatprep.subr.bf16.mxu1 %v2231_v58 }
 0x5c5   :  { %2228 = vmatprep.subr.bf16.mxu0 %v2227_v52  ;;  %2234 = vmatpush1.bf16.msra.mxu1 %v2233_v47 }
 0x5c6   :  { %2230 = vmatpush1.bf16.msra.mxu0 %v2229_v37  ;;  %2111 = vmatprep.subr.msk.mxu1 %vm3958_vm1, %v1941_v27 }
 0x5c7   :  { %2106 = vmatprep.subr.msk.mxu0 %vm3957_vm6, %v1841_v9 }
 0x5c9   :  { %2112 = vmatpush1.msk.msra.mxu1 %vm3960_vm11, %v2110_v46 }
 0x5ca   :  { %2107 = vmatpush1.msk.msra.mxu0 %vm3959_vm10, %v1839_v54  ;;  %2113 = vmatmul.mubr.msk.f32.vlgmr.msra.gmra.mrb[8].mxu1 %vm1847_vm7, %v1837_v8 }
 0x5cb   :  { %2108 = vmatmul.mubr.msk.f32.vlgmr.msra.gmra.mrb[8].mxu0 %vm1847_vm7, %v1837_v8 }
 0x69d   :  { %v2012_v10 = vpop.f32.mrb[8].mxu1 }
 0x69e   :  { %v1921_v3 = vpop.f32.mrb[8].mxu0  ;;  %v2013_v12 = vadd.f32 %v2012_v10, %v1845_v36  ;;  %v2014_v30 = vpop.f32.mrb[9].mxu1 }
 0x69f   :  { %v1922_v22 = vadd.f32 %v1921_v3, %v1845_v36  ;;  %v1923_v1 = vpop.f32.mrb[9].mxu0  ;;  %v2015_v39 = vadd.f32 %v2014_v30, %v1845_v36 }
 0x6a0   :  { %v1924_v14 = vadd.f32 %v1923_v1, %v1845_v36 }
 0x6a1   :  { %v2019_v59 = vcombine.low %v2013_v12, %v2015_v39 }
 0x6a2   :  { %v1928_v11 = vcombine.low %v1922_v22, %v1924_v14 }
 0x6a3   :  { %2114 = vst.sshfl [vmem:[#allocation2 + $0x4] sm:$0x33 pattern:$0x76325410] %v2019_v59 }
 0x6a4   :  { %2109 = vst.sshfl [vmem:[#allocation2] sm:$0x33 pattern:$0x76325410] %v1928_v11 }
 0x6a5   :  { %2605 = shalt.err (!%p2602_p4)
}
 0x6a6   :  { %s2606_s14 = scalar_lea.hbm %s3880_s13, 128 }
 0x6a7   :  { %p2607_p5 = scmp.ne.s32.totalorder %s3880_s13, %s2606_s14  ;;  %p2610_p6 = scmp.lt.u32.totalorder %s2606_s14, %s3880_s13 }
 0x6a9   :  { %p2612_p7 = pnand %p2610_p6, %p2607_p5 }
 0x6ab   :  { %2615 = shalt.err (!%p2612_p7)
}
 0x6ac   :  { %s2627_s23 = smov 64   ;;  %s2628_s24 = smov 4  }
 0x6ad   :  { %2041 = dma.vmem_to_hbm [thread:$0]  %s2036_s11, 128, %s3880_s13, [#allocation3], %s2627_s23, %s2627_s23, %s2628_s24  }
 0x6ae   :  { %2616 = dma.done.wait [#allocation3], 128  }
 0x6af   :  { %2617 = vsyncadd [#allocation3], 4294967168 }
 0x6b0   :  { %2045 = vsyncpa [#allocation3], 1 }

</bundles_post_ra>
